<compile_context>
chip_gen: v7x
topology: tpu7x:2x2x1
jax: 0.10.0
libtpu: 0.0.40
codegen_flags: <defaults>
</compile_context>

<pallas_src>
import functools

import jax
import jax.numpy as jnp
from jax import lax
from jax.experimental import pallas as pl
from jax.experimental.pallas import tpu as pltpu

_EPS = 1e-5
_VMEM_BUDGET = 24 * 1024 * 1024      # target for the kernel's buffer working set
_VMEM_LIMIT = 48 * 1024 * 1024       # scoped VMEM limit handed to Mosaic


def _round_up(x, m):
    return (x + m - 1) // m * m


# ----------------------------- Pallas kernel ------------------------------- #

def _matmul_bn_kernel(x_ref, w_ref, shift_ref, *rest, relu: bool,
                      add_residual: bool):
    """One-shot (tm, K) x (K, tn) MXU matmul (f32 accumulation) fused with the
    folded-BatchNorm shift [+ residual] [+ ReLU] epilogue."""
    if add_residual:
        res_ref, o_ref = rest
    else:
        (o_ref,) = rest

    acc = jnp.dot(x_ref[...], w_ref[...], preferred_element_type=jnp.float32)
    acc = acc + shift_ref[...]                       # folded BatchNorm shift
    if add_residual:
        acc = acc + res_ref[...].astype(jnp.float32)
    if relu:
        acc = jnp.maximum(acc, 0.0)
    o_ref[...] = acc.astype(o_ref.dtype)


def _pick_tiles(M, Kp, Np, res_itemsize, out_itemsize):
    """Pick (tm, tn): ~24 MiB double-buffered working set, 256-aligned-friendly
    N tile, and >= 4 parallel output tiles (v7x two-TensorCore balance)."""
    if Np <= 512:
        tn = Np
    elif Np % 512 == 0:
        tn = 512
    elif Np % 256 == 0:
        tn = 256
    else:
        tn = 128

    def vmem_bytes(tm):
        return (2 * tm * Kp * 2                 # streamed x (bf16, double-buffered)
                + 2 * Kp * tn * 2               # resident weight (bf16)
                + 2 * tm * tn * out_itemsize    # output tile
                + 2 * tm * tn * res_itemsize    # optional residual tile (bf16)
                + 2 * tn * 4)                   # BN shift row

    m8 = _round_up(M, 8)
    tm = 8
    for cand in (1024, 512, 256, 128, 64, 32, 16, 8):
        if cand <= m8 and vmem_bytes(cand) <= _VMEM_BUDGET:
            tm = cand
            break
    # v7x has 2 TensorCores: make sure the parallel grid can split when M allows.
    while tm > 128 and pl.cdiv(M, tm) * (Np // tn) < 4:
        tm //= 2
    return tm, tn


def matmul_bn(x2d, w2d, scale, shift, residual=None, relu=True,
              out_dtype=jnp.bfloat16):
    """Fused (x2d @ (w2d * scale)) + shift [+ residual] [-> ReLU] via Pallas.

    x2d: (M, Kx) with Kx >= w2d.shape[0] (any extra columns must be zeros),
    w2d: (Kw, N), scale/shift: (N,), residual: (M, <=Np) or None.
    Returns the column-padded (M, Np) result (padded columns are zero) so the
    next layer can consume it directly without an extra pad/slice pass.
    """
    M, Kx = x2d.shape
    Kw, N = w2d.shape
    assert Kx >= Kw, (Kx, Kw)

    Kp = _round_up(Kx, 128)
    Np = _round_up(N, 128) if N <= 128 else _round_up(N, 256)

    # Weight-side prep (small): fold BN scale into columns, pad to (Kp, Np).
    wf = w2d.astype(jnp.float32) * scale.astype(jnp.float32)[None, :]
    if (Kp, Np) != (Kw, N):
        wf = jnp.pad(wf, ((0, Kp - Kw), (0, Np - N)))
    wf = wf.astype(jnp.bfloat16)

    sh = shift.astype(jnp.float32)
    if Np != N:
        sh = jnp.pad(sh, (0, Np - N))
    sh = sh.reshape(1, Np)

    # Activation prep: cast / pad only when not already in the right form.
    xb = x2d if x2d.dtype == jnp.bfloat16 else x2d.astype(jnp.bfloat16)
    if Kp != Kx:
        xb = jnp.pad(xb, ((0, 0), (0, Kp - Kx)))

    rb = None
    if residual is not None:
        assert residual.shape[0] == M and residual.shape[1] <= Np
        rb = (residual if residual.dtype == jnp.bfloat16
              else residual.astype(jnp.bfloat16))
        if rb.shape[1] != Np:
            rb = jnp.pad(rb, ((0, 0), (0, Np - rb.shape[1])))

    out_itemsize = jnp.dtype(out_dtype).itemsize
    tm, tn = _pick_tiles(M, Kp, Np, 2 if residual is not None else 0,
                         out_itemsize)
    grid_n = Np // tn
    grid_m = pl.cdiv(M, tm)          # last M block may be partial (masked store)

    # Grid = (N tiles, M tiles): M innermost, so the weight/shift block indices
    # are constant across consecutive steps -> Pallas keeps them resident in
    # VMEM (one HBM read per N tile) while the activation tiles stream.
    in_specs = [
        pl.BlockSpec((tm, Kp), lambda j, i: (i, 0)),
        pl.BlockSpec((Kp, tn), lambda j, i: (0, j)),
        pl.BlockSpec((1, tn), lambda j, i: (0, j)),
    ]
    args = [xb, wf, sh]
    if residual is not None:
        in_specs.append(pl.BlockSpec((tm, tn), lambda j, i: (i, j)))
        args.append(rb)

    bytes_accessed = (grid_n * M * Kp * 2 + Kp * Np * 2 + M * Np * out_itemsize
                      + (M * Np * 2 if residual is not None else 0))
    cost = pl.CostEstimate(flops=2 * M * Np * Kp, transcendentals=0,
                           bytes_accessed=bytes_accessed)

    kernel = functools.partial(_matmul_bn_kernel, relu=relu,
                               add_residual=residual is not None)

    # TODO(synk): if per-tile compute is shorter than the x-tile DMA on a given
    # generation, try pipeline_mode=pl.Buffered(3) on the streamed x BlockSpec.
    return pl.pallas_call(
        kernel,
        out_shape=jax.ShapeDtypeStruct((M, Np), out_dtype),
        grid_spec=pltpu.PrefetchScalarGridSpec(
            num_scalar_prefetch=0,
            grid=(grid_n, grid_m),
            in_specs=in_specs,
            out_specs=pl.BlockSpec((tm, tn), lambda j, i: (i, j)),
        ),
        compiler_params=pltpu.CompilerParams(
            dimension_semantics=("parallel", "parallel"),
            vmem_limit_bytes=_VMEM_LIMIT),
        cost_estimate=cost,
    )(*args)


# ------------------------------- Glue (JAX) -------------------------------- #

def _fold_bn(bn):
    gamma, beta, mean, var = bn
    scale = gamma / jnp.sqrt(var + _EPS)
    shift = beta - mean * scale
    return scale, shift


def _im2col_3x3(x_nhwc, stride):
    """3x3, pad=1 patch extraction (materialized).  Returns (N*Ho*Wo, 9*C)."""
    N, H, W, C = x_nhwc.shape
    xp = jnp.pad(x_nhwc, ((0, 0), (1, 1), (1, 1), (0, 0)))
    Ho = (H - 1) // stride + 1
    Wo = (W - 1) // stride + 1
    cols = []
    for dh in range(3):
        for dw in range(3):
            cols.append(xp[:, dh:dh + stride * (Ho - 1) + 1:stride,
                           dw:dw + stride * (Wo - 1) + 1:stride, :])
    patches = jnp.concatenate(cols, axis=-1)              # (N, Ho, Wo, 9*C)
    return patches.reshape(N * Ho * Wo, 9 * C)


def bottleneck_forward(x_nchw, params, stride=1):
    Nb, C, H, W = x_nchw.shape
    Ho = (H - 1) // stride + 1
    Wo = (W - 1) // stride + 1

    # Entry layout pass: NCHW -> NHWC, bf16, channels padded to a lane multiple.
    Cp = _round_up(C, 128)
    x2d = jnp.transpose(x_nchw, (0, 2, 3, 1)).reshape(Nb * H * W, C)
    x2d = x2d.astype(jnp.bfloat16)
    if Cp != C:
        x2d = jnp.pad(x2d, ((0, 0), (0, Cp - C)))

    # ---- residual branch ----
    if 'wd' in params:
        if stride == 1:
            xs2d = x2d
        else:
            xs2d = x2d.reshape(Nb, H, W, Cp)[:, ::stride, ::stride, :]
            xs2d = xs2d.reshape(Nb * Ho * Wo, Cp)
        wd = params['wd'][:, :, 0, 0].T                   # (C, exp)
        scd, shd = _fold_bn(params['bnd'])
        residual = matmul_bn(xs2d, wd, scd, shd, relu=False,
                             out_dtype=jnp.bfloat16)
    else:
        residual = x2d       # identity: reuse conv1's bf16/padded input buffer

    # ---- main branch ----
    w1 = params['w1'][:, :, 0, 0].T                       # (C, C1)
    sc1, sh1 = _fold_bn(params['bn1'])
    y1 = matmul_bn(x2d, w1, sc1, sh1, relu=True, out_dtype=jnp.bfloat16)

    C1p = y1.shape[1]                                     # padded channel count
    patches = _im2col_3x3(y1.reshape(Nb, H, W, C1p), stride)   # (M1, 9*C1p)
    w2 = jnp.transpose(params['w2'], (2, 3, 1, 0))        # (3, 3, C1, C2)
    C1 = w2.shape[2]
    if C1p != C1:
        w2 = jnp.pad(w2, ((0, 0), (0, 0), (0, C1p - C1), (0, 0)))
    w2 = w2.reshape(9 * C1p, -1)
    sc2, sh2 = _fold_bn(params['bn2'])
    y2 = matmul_bn(patches, w2, sc2, sh2, relu=True, out_dtype=jnp.bfloat16)

    w3 = params['w3'][:, :, 0, 0].T                       # (C2, exp)
    sc3, sh3 = _fold_bn(params['bn3'])
    y3 = matmul_bn(y2, w3, sc3, sh3, residual=residual, relu=True,
                   out_dtype=jnp.float32)

    exp = params['w3'].shape[0]
    if y3.shape[1] != exp:
        y3 = y3[:, :exp]
    out = y3.reshape(Nb, Ho, Wo, exp)
    return jnp.transpose(out, (0, 3, 1, 2))               # exit layout pass


# ------------------------ deterministic param init ------------------------- #

def init_params(key, in_planes, out_planes, stride):
    exp = 4 * out_planes
    ks = jax.random.split(key, 8)

    def conv_w(k, co, ci, kh, kw):
        fan_in = ci * kh * kw
        return jax.random.normal(k, (co, ci, kh, kw), jnp.float32) / jnp.sqrt(fan_in)

    def bn_p(k, c):
        k1, k2, k3, k4 = jax.random.split(k, 4)
        gamma = 1.0 + 0.1 * jax.random.normal(k1, (c,), jnp.float32)
        beta = 0.1 * jax.random.normal(k2, (c,), jnp.float32)
        mean = 0.1 * jax.random.normal(k3, (c,), jnp.float32)
        var = jax.random.uniform(k4, (c,), jnp.float32, minval=0.5, maxval=1.5)
        return gamma, beta, mean, var

    p = {
        'w1': conv_w(ks[0], out_planes, in_planes, 1, 1), 'bn1': bn_p(ks[1], out_planes),
        'w2': conv_w(ks[2], out_planes, out_planes, 3, 3), 'bn2': bn_p(ks[3], out_planes),
        'w3': conv_w(ks[4], exp, out_planes, 1, 1), 'bn3': bn_p(ks[5], exp),
    }
    if stride != 1 or in_planes != exp:
        p['wd'] = conv_w(ks[6], exp, in_planes, 1, 1)
        p['bnd'] = bn_p(ks[7], exp)
    return p


# ------------------------------ reference ---------------------------------- #

def reference_forward(x_nchw, params, stride=1):
    def conv(x, w, s=1, p=0):
        return lax.conv_general_dilated(x, w, (s, s), [(p, p), (p, p)],
                                        dimension_numbers=('NCHW', 'OIHW', 'NCHW'))

    def bn(x, bnp):
        g, b, m, v = bnp
        return (x - m[None, :, None, None]) / jnp.sqrt(v[None, :, None, None] + _EPS) \
            * g[None, :, None, None] + b[None, :, None, None]

    if 'wd' in params:
        residual = bn(conv(x_nchw, params['wd'], s=stride), params['bnd'])
    else:
        residual = x_nchw
    o = jax.nn.relu(bn(conv(x_nchw, params['w1']), params['bn1']))
    o = jax.nn.relu(bn(conv(o, params['w2'], s=stride, p=1), params['bn2']))
    o = bn(conv(o, params['w3']), params['bn3'])
    return jax.nn.relu(o + residual)


# --------------------------------- main ------------------------------------ #

if __name__ == "__main__":
    key = jax.random.PRNGKey(0)
    Nb, H, W = 2, 16, 16
    # (in_planes, out_planes, stride): downsample / strided-downsample / identity
    configs = [(4, 4, 1), (16, 4, 2), (16, 4, 1)]

    fwd = jax.jit(bottleneck_forward, static_argnames=('stride',))

    for idx, (cin, cout, stride) in enumerate(configs):
        kx, kp = jax.random.split(jax.random.fold_in(key, idx))
        x = jax.random.normal(kx, (Nb, cin, H, W), jnp.float32)
        params = init_params(kp, cin, cout, stride)

        out = jax.block_until_ready(fwd(x, params, stride=stride))
        ref = reference_forward(x, params, stride=stride)

        Ho = (H - 1) // stride + 1
        assert out.shape == (Nb, 4 * cout, Ho, Ho), (out.shape, stride)
        # bf16 MXU operands -> compare with a relative-to-max tolerance.
        rel_err = float(jnp.max(jnp.abs(out - ref)) / (jnp.max(jnp.abs(ref)) + 1e-6))
        assert rel_err < 5e-2, (idx, rel_err)

    print("KERNEL_OK")
</pallas_src>

<mosaic_0001>
module attributes {stable_mosaic.version = 11 : i64} {
  func.func @_matmul_bn_kernel(%arg0: i32, %arg1: i32, %arg2: memref<128x128xbf16, #tpu.memory_space<vmem>>, %arg3: memref<128x128xbf16, #tpu.memory_space<vmem>>, %arg4: memref<1x128xf32, #tpu.memory_space<vmem>>, %arg5: memref<128x128xbf16, #tpu.memory_space<vmem>>) attributes {dimension_semantics = [#tpu.dimension_semantics<parallel>, #tpu.dimension_semantics<parallel>], iteration_bounds = array<i64: 1, 4>, scalar_prefetch = 0 : i64, scratch_operands = 0 : i64, tpu.core_type = #tpu.core_type<tc>, window_params = [{transform_indices = @transform_0, window_bounds = array<i64: 128, 128>}, {transform_indices = @transform_1, window_bounds = array<i64: 128, 128>}, {transform_indices = @transform_2, window_bounds = array<i64: 1, 128>}, {transform_indices = @transform_3, window_bounds = array<i64: 128, 128>}]} {
    %c0 = arith.constant 0 : index
    %c0_0 = arith.constant 0 : index
    %0 = vector.load %arg2[%c0, %c0_0] : memref<128x128xbf16, #tpu.memory_space<vmem>>, vector<128x128xbf16>
    %c0_1 = arith.constant 0 : index
    %c0_2 = arith.constant 0 : index
    %1 = vector.load %arg3[%c0_1, %c0_2] : memref<128x128xbf16, #tpu.memory_space<vmem>>, vector<128x128xbf16>
    %cst = arith.constant dense<0.000000e+00> : vector<128x128xf32>
    %2 = tpu.matmul %0, %1, %cst {dimension_numbers = #tpu.dot_dimension_numbers<[1], [0], [0], [1], [0, 0, 1, 1], [], []>} : vector<128x128xbf16>, vector<128x128xbf16>, vector<128x128xf32> -> vector<128x128xf32>
    %c0_3 = arith.constant 0 : index
    %c0_4 = arith.constant 0 : index
    %3 = vector.load %arg4[%c0_3, %c0_4] : memref<1x128xf32, #tpu.memory_space<vmem>>, vector<1x128xf32>
    %4 = vector.broadcast %3 : vector<1x128xf32> to vector<128x128xf32>
    %5 = arith.addf %2, %4 : vector<128x128xf32>
    %cst_5 = arith.constant 0.000000e+00 : f32
    %6 = vector.broadcast %cst_5 : f32 to vector<128x128xf32>
    %7 = arith.maximumf %5, %6 : vector<128x128xf32>
    %8 = arith.truncf %7 : vector<128x128xf32> to vector<128x128xbf16>
    %c0_6 = arith.constant 0 : index
    %c0_7 = arith.constant 0 : index
    %9 = vector.load %arg5[%c0_6, %c0_7] : memref<128x128xbf16, #tpu.memory_space<vmem>>, vector<128x128xbf16>
    tpu.vector_store %arg5[%c0_6, %c0_7], %8 {strides = array<i32>} : memref<128x128xbf16, #tpu.memory_space<vmem>>, vector<128x128xbf16>,
    return
  }
  func.func @transform_0(%arg0: i32, %arg1: i32) -> (i32, i32) {
    %c0_i32 = arith.constant 0 : i32
    %c0_i32_0 = arith.constant 0 : i32
    return %arg1, %c0_i32 : i32, i32
  }
  func.func @transform_1(%arg0: i32, %arg1: i32) -> (i32, i32) {
    %c0_i32 = arith.constant 0 : i32
    %c0_i32_0 = arith.constant 0 : i32
    return %c0_i32, %arg0 : i32, i32
  }
  func.func @transform_2(%arg0: i32, %arg1: i32) -> (i32, i32) {
    %c0_i32 = arith.constant 0 : i32
    %c0_i32_0 = arith.constant 0 : i32
    return %c0_i32, %arg0 : i32, i32
  }
  func.func @transform_3(%arg0: i32, %arg1: i32) -> (i32, i32) {
    %c0_i32 = arith.constant 0 : i32
    return %arg1, %arg0 : i32, i32
  }
}

module attributes {stable_mosaic.version = 11 : i64} {
  func.func @_matmul_bn_kernel(%arg0: i32, %arg1: i32, %arg2: memref<128x128xbf16, #tpu.memory_space<vmem>>, %arg3: memref<128x128xbf16, #tpu.memory_space<vmem>>, %arg4: memref<1x128xf32, #tpu.memory_space<vmem>>, %arg5: memref<128x128xbf16, #tpu.memory_space<vmem>>) attributes {dimension_semantics = [#tpu.dimension_semantics<parallel>, #tpu.dimension_semantics<parallel>], iteration_bounds = array<i64: 1, 4>, scalar_prefetch = 0 : i64, scratch_operands = 0 : i64, tpu.core_type = #tpu.core_type<tc>, window_params = [{transform_indices = @transform_0, window_bounds = array<i64: 128, 128>}, {transform_indices = @transform_1, window_bounds = array<i64: 128, 128>}, {transform_indices = @transform_2, window_bounds = array<i64: 1, 128>}, {transform_indices = @transform_3, window_bounds = array<i64: 128, 128>}]} {
    %c0 = arith.constant 0 : index
    %c0_0 = arith.constant 0 : index
    %0 = vector.load %arg2[%c0, %c0_0] : memref<128x128xbf16, #tpu.memory_space<vmem>>, vector<128x128xbf16>
    %c0_1 = arith.constant 0 : index
    %c0_2 = arith.constant 0 : index
    %1 = vector.load %arg3[%c0_1, %c0_2] : memref<128x128xbf16, #tpu.memory_space<vmem>>, vector<128x128xbf16>
    %cst = arith.constant dense<0.000000e+00> : vector<128x128xf32>
    %2 = tpu.matmul %0, %1, %cst {dimension_numbers = #tpu.dot_dimension_numbers<[1], [0], [0], [1], [0, 0, 1, 1], [], []>} : vector<128x128xbf16>, vector<128x128xbf16>, vector<128x128xf32> -> vector<128x128xf32>
    %c0_3 = arith.constant 0 : index
    %c0_4 = arith.constant 0 : index
    %3 = vector.load %arg4[%c0_3, %c0_4] : memref<1x128xf32, #tpu.memory_space<vmem>>, vector<1x128xf32>
    %4 = vector.broadcast %3 : vector<1x128xf32> to vector<128x128xf32>
    %5 = arith.addf %2, %4 : vector<128x128xf32>
    %6 = arith.truncf %5 : vector<128x128xf32> to vector<128x128xbf16>
    %c0_5 = arith.constant 0 : index
    %c0_6 = arith.constant 0 : index
    %7 = vector.load %arg5[%c0_5, %c0_6] : memref<128x128xbf16, #tpu.memory_space<vmem>>, vector<128x128xbf16>
    tpu.vector_store %arg5[%c0_5, %c0_6], %6 {strides = array<i32>} : memref<128x128xbf16, #tpu.memory_space<vmem>>, vector<128x128xbf16>,
    return
  }
  func.func @transform_0(%arg0: i32, %arg1: i32) -> (i32, i32) {
    %c0_i32 = arith.constant 0 : i32
    %c0_i32_0 = arith.constant 0 : i32
    return %arg1, %c0_i32 : i32, i32
  }
  func.func @transform_1(%arg0: i32, %arg1: i32) -> (i32, i32) {
    %c0_i32 = arith.constant 0 : i32
    %c0_i32_0 = arith.constant 0 : i32
    return %c0_i32, %arg0 : i32, i32
  }
  func.func @transform_2(%arg0: i32, %arg1: i32) -> (i32, i32) {
    %c0_i32 = arith.constant 0 : i32
    %c0_i32_0 = arith.constant 0 : i32
    return %c0_i32, %arg0 : i32, i32
  }
  func.func @transform_3(%arg0: i32, %arg1: i32) -> (i32, i32) {
    %c0_i32 = arith.constant 0 : i32
    return %arg1, %arg0 : i32, i32
  }
}

module attributes {stable_mosaic.version = 11 : i64} {
  func.func @_matmul_bn_kernel(%arg0: i32, %arg1: i32, %arg2: memref<128x1152xbf16, #tpu.memory_space<vmem>>, %arg3: memref<1152x128xbf16, #tpu.memory_space<vmem>>, %arg4: memref<1x128xf32, #tpu.memory_space<vmem>>, %arg5: memref<128x128xbf16, #tpu.memory_space<vmem>>) attributes {dimension_semantics = [#tpu.dimension_semantics<parallel>, #tpu.dimension_semantics<parallel>], iteration_bounds = array<i64: 1, 4>, scalar_prefetch = 0 : i64, scratch_operands = 0 : i64, tpu.core_type = #tpu.core_type<tc>, window_params = [{transform_indices = @transform_0, window_bounds = array<i64: 128, 1152>}, {transform_indices = @transform_1, window_bounds = array<i64: 1152, 128>}, {transform_indices = @transform_2, window_bounds = array<i64: 1, 128>}, {transform_indices = @transform_3, window_bounds = array<i64: 128, 128>}]} {
    %c0 = arith.constant 0 : index
    %c0_0 = arith.constant 0 : index
    %0 = vector.load %arg2[%c0, %c0_0] : memref<128x1152xbf16, #tpu.memory_space<vmem>>, vector<128x1152xbf16>
    %c0_1 = arith.constant 0 : index
    %c0_2 = arith.constant 0 : index
    %1 = vector.load %arg3[%c0_1, %c0_2] : memref<1152x128xbf16, #tpu.memory_space<vmem>>, vector<1152x128xbf16>
    %cst = arith.constant dense<0.000000e+00> : vector<128x128xf32>
    %2 = tpu.matmul %0, %1, %cst {dimension_numbers = #tpu.dot_dimension_numbers<[1], [0], [0], [1], [0, 0, 1, 1], [], []>} : vector<128x1152xbf16>, vector<1152x128xbf16>, vector<128x128xf32> -> vector<128x128xf32>
    %c0_3 = arith.constant 0 : index
    %c0_4 = arith.constant 0 : index
    %3 = vector.load %arg4[%c0_3, %c0_4] : memref<1x128xf32, #tpu.memory_space<vmem>>, vector<1x128xf32>
    %4 = vector.broadcast %3 : vector<1x128xf32> to vector<128x128xf32>
    %5 = arith.addf %2, %4 : vector<128x128xf32>
    %cst_5 = arith.constant 0.000000e+00 : f32
    %6 = vector.broadcast %cst_5 : f32 to vector<128x128xf32>
    %7 = arith.maximumf %5, %6 : vector<128x128xf32>
    %8 = arith.truncf %7 : vector<128x128xf32> to vector<128x128xbf16>
    %c0_6 = arith.constant 0 : index
    %c0_7 = arith.constant 0 : index
    %9 = vector.load %arg5[%c0_6, %c0_7] : memref<128x128xbf16, #tpu.memory_space<vmem>>, vector<128x128xbf16>
    tpu.vector_store %arg5[%c0_6, %c0_7], %8 {strides = array<i32>} : memref<128x128xbf16, #tpu.memory_space<vmem>>, vector<128x128xbf16>,
    return
  }
  func.func @transform_0(%arg0: i32, %arg1: i32) -> (i32, i32) {
    %c0_i32 = arith.constant 0 : i32
    %c0_i32_0 = arith.constant 0 : i32
    return %arg1, %c0_i32 : i32, i32
  }
  func.func @transform_1(%arg0: i32, %arg1: i32) -> (i32, i32) {
    %c0_i32 = arith.constant 0 : i32
    %c0_i32_0 = arith.constant 0 : i32
    return %c0_i32, %arg0 : i32, i32
  }
  func.func @transform_2(%arg0: i32, %arg1: i32) -> (i32, i32) {
    %c0_i32 = arith.constant 0 : i32
    %c0_i32_0 = arith.constant 0 : i32
    return %c0_i32, %arg0 : i32, i32
  }
  func.func @transform_3(%arg0: i32, %arg1: i32) -> (i32, i32) {
    %c0_i32 = arith.constant 0 : i32
    return %arg1, %arg0 : i32, i32
  }
}

module attributes {stable_mosaic.version = 11 : i64} {
  func.func @_matmul_bn_kernel(%arg0: i32, %arg1: i32, %arg2: memref<128x128xbf16, #tpu.memory_space<vmem>>, %arg3: memref<128x128xbf16, #tpu.memory_space<vmem>>, %arg4: memref<1x128xf32, #tpu.memory_space<vmem>>, %arg5: memref<128x128xbf16, #tpu.memory_space<vmem>>, %arg6: memref<128x128xf32, #tpu.memory_space<vmem>>) attributes {dimension_semantics = [#tpu.dimension_semantics<parallel>, #tpu.dimension_semantics<parallel>], iteration_bounds = array<i64: 1, 4>, scalar_prefetch = 0 : i64, scratch_operands = 0 : i64, tpu.core_type = #tpu.core_type<tc>, window_params = [{transform_indices = @transform_0, window_bounds = array<i64: 128, 128>}, {transform_indices = @transform_1, window_bounds = array<i64: 128, 128>}, {transform_indices = @transform_2, window_bounds = array<i64: 1, 128>}, {transform_indices = @transform_3, window_bounds = array<i64: 128, 128>}, {transform_indices = @transform_4, window_bounds = array<i64: 128, 128>}]} {
    %c0 = arith.constant 0 : index
    %c0_0 = arith.constant 0 : index
    %0 = vector.load %arg2[%c0, %c0_0] : memref<128x128xbf16, #tpu.memory_space<vmem>>, vector<128x128xbf16>
    %c0_1 = arith.constant 0 : index
    %c0_2 = arith.constant 0 : index
    %1 = vector.load %arg3[%c0_1, %c0_2] : memref<128x128xbf16, #tpu.memory_space<vmem>>, vector<128x128xbf16>
    %cst = arith.constant dense<0.000000e+00> : vector<128x128xf32>
    %2 = tpu.matmul %0, %1, %cst {dimension_numbers = #tpu.dot_dimension_numbers<[1], [0], [0], [1], [0, 0, 1, 1], [], []>} : vector<128x128xbf16>, vector<128x128xbf16>, vector<128x128xf32> -> vector<128x128xf32>
    %c0_3 = arith.constant 0 : index
    %c0_4 = arith.constant 0 : index
    %3 = vector.load %arg4[%c0_3, %c0_4] : memref<1x128xf32, #tpu.memory_space<vmem>>, vector<1x128xf32>
    %4 = vector.broadcast %3 : vector<1x128xf32> to vector<128x128xf32>
    %5 = arith.addf %2, %4 : vector<128x128xf32>
    %c0_5 = arith.constant 0 : index
    %c0_6 = arith.constant 0 : index
    %6 = vector.load %arg5[%c0_5, %c0_6] : memref<128x128xbf16, #tpu.memory_space<vmem>>, vector<128x128xbf16>
    %7 = arith.extf %6 : vector<128x128xbf16> to vector<128x128xf32>
    %8 = arith.addf %5, %7 : vector<128x128xf32>
    %cst_7 = arith.constant 0.000000e+00 : f32
    %9 = vector.broadcast %cst_7 : f32 to vector<128x128xf32>
    %10 = arith.maximumf %8, %9 : vector<128x128xf32>
    %c0_8 = arith.constant 0 : index
    %c0_9 = arith.constant 0 : index
    %11 = vector.load %arg6[%c0_8, %c0_9] : memref<128x128xf32, #tpu.memory_space<vmem>>, vector<128x128xf32>
    tpu.vector_store %arg6[%c0_8, %c0_9], %10 {strides = array<i32>} : memref<128x128xf32, #tpu.memory_space<vmem>>, vector<128x128xf32>,
    return
  }
  func.func @transform_0(%arg0: i32, %arg1: i32) -> (i32, i32) {
    %c0_i32 = arith.constant 0 : i32
    %c0_i32_0 = arith.constant 0 : i32
    return %arg1, %c0_i32 : i32, i32
  }
  func.func @transform_1(%arg0: i32, %arg1: i32) -> (i32, i32) {
    %c0_i32 = arith.constant 0 : i32
    %c0_i32_0 = arith.constant 0 : i32
    return %c0_i32, %arg0 : i32, i32
  }
  func.func @transform_2(%arg0: i32, %arg1: i32) -> (i32, i32) {
    %c0_i32 = arith.constant 0 : i32
    %c0_i32_0 = arith.constant 0 : i32
    return %c0_i32, %arg0 : i32, i32
  }
  func.func @transform_3(%arg0: i32, %arg1: i32) -> (i32, i32) {
    %c0_i32 = arith.constant 0 : i32
    return %arg1, %arg0 : i32, i32
  }
  func.func @transform_4(%arg0: i32, %arg1: i32) -> (i32, i32) {
    %c0_i32 = arith.constant 0 : i32
    return %arg1, %arg0 : i32, i32
  }
}

</mosaic_0001>

<bundles_post_ra>
// kernel: bottleneck_forward.5
= control target key start
LH: loop header
LB: loop body
LE: loop exit
PB: predicated region body
PF: predicated region fallthrough
CT: control target
= control target key end

     0   :  { %s913_s12 = smov 0   ;;  %s915_s13 = smov 0   ;;  %s1000_s0 = inlined_call_operand.vmem [shape: bf16[512,128], index: 0, kind: input, shape index: {}]   ;;  %s1001_s1 = inlined_call_operand.vmem [shape: bf16[128,128], index: 1, kind: input, shape index: {}]   ;;  %s1002_s2 = inlined_call_operand.vmem [shape: f32[1,128], index: 2, kind: input, shape index: {}]   ;;  %s1003_s3 = inlined_call_operand.vmem [shape: bf16[512,128], index: 3, kind: output, shape index: {}]  }
   0x1   :  { %s917_s14 = smov 0  }
   0x2 LB: > { %s22_s15 = sadd.s32 1, %s887_s13  ;;  %p662_p0 = scmp.ge.s32.totalorder %s891_s14, 1  ;;  %s891_s14 = sphi %s917_s14, %s13_s14   ;;  %s887_s13 = sphi %s915_s13, %s1005_s13   ;;  %s883_s12 = sphi %s913_s12, %s1004_s12  }
   0x3   : > { %p23_p1 = scmp.ge.s32.totalorder %s22_s15, 4  ;;  %p169_p2 = scmp.lt.s32.totalorder %s891_s14, 5 }
   0x5   : > { %s1007_s15 = smov (%p23_p1, %s22_s15), 0  ;;  %p170_p3 = pnand %p662_p0, %p169_p2 }
   0x6   : > { %v853_v0 = vld [vmem:[%s1001_s1] sm:$0xff] (!%p170_p3)   ;;  %s663_s18 = sshll.u32 (!%p170_p3), %s883_s12, 4  ;;  %v854_v1 = vld [vmem:[%s1001_s1 + $0x8] sm:$0xff] (!%p170_p3)   ;;  %v855_v2 = vld [vmem:[%s1001_s1 + $0x10] sm:$0xff] (!%p170_p3)  }
   0x7   : > { %173 = sbr.rel (%p170_p3) target bundleno = 269 (0x10d), region = 32  ;;  %p204_p4 = scmp.lt.s32.totalorder (!%p170_p3), %s663_s18, 63  ;;  %781 = vmatprep.subr.bf16.mxu0 (!%p170_p3), %v853_v0  ;;  %813 = vmatprep.subr.bf16.mxu1 (!%p170_p3), %v853_v0  ;;  %v856_v3 = vld [vmem:[%s1001_s1 + $0x18] sm:$0xff] (!%p170_p3)   ;;  %v857_v6 = vld [vmem:[%s1001_s1 + $0x20] sm:$0xff] (!%p170_p3)   ;;  %v858_v7 = vld [vmem:[%s1001_s1 + $0x28] sm:$0xff] (!%p170_p3)  }
   0x8   : > { %782 = vmatpush3.bf16.msra.mxu0 (!%p170_p3), %v853_v0  ;;  %821 = vmatpush3.bf16.msra.mxu1 (!%p170_p3), %v853_v0  ;;  %v859_v8 = vld [vmem:[%s1001_s1 + $0x30] sm:$0xff] (!%p170_p3)   ;;  %v860_v9 = vld [vmem:[%s1001_s1 + $0x38] sm:$0xff] (!%p170_p3)   ;;  %v667_v16 = vld [vmem:[%s1002_s2] ss:$0 sm:$0xff] (!%p170_p3) }
   0x9   : > { %783 = vmatprep.subr.bf16.mxu0 (!%p170_p3), %v854_v1  ;;  %814 = vmatprep.subr.bf16.mxu1 (!%p170_p3), %v854_v1 }
   0xc   : > { %784 = vmatpush3.bf16.msra.mxu0 (!%p170_p3), %v854_v1  ;;  %822 = vmatpush3.bf16.msra.mxu1 (!%p170_p3), %v854_v1 }
   0xd   : > { %785 = vmatprep.subr.bf16.mxu0 (!%p170_p3), %v855_v2  ;;  %815 = vmatprep.subr.bf16.mxu1 (!%p170_p3), %v855_v2 }
   0xe   : > { %s1009_s18 = smov (!%p204_p4, %s663_s18), 63 }
   0xf   : > { %s664_s23 = sshll.u32 %s1009_s18, 2 }
  0x10   : > { %s948_s26 = scalar_lea.vmem %s1000_s0, %s664_s23  ;;  %786 = vmatpush3.bf16.msra.mxu0 %v855_v2  ;;  %823 = vmatpush3.bf16.msra.mxu1 %v855_v2  ;;  %s981_s17 = scalar_lea.vmem %s1003_s3, %s664_s23 }
  0x11   : > { %v861_v4 = vld [vmem:[%s948_s26] sm:$0xff]   ;;  %787 = vmatprep.subr.bf16.mxu0 %v856_v3  ;;  %816 = vmatprep.subr.bf16.mxu1 %v856_v3  ;;  %v863_v10 = vld [vmem:[%s948_s26 + $0x8] sm:$0xff]   ;;  %v865_v12 = vld [vmem:[%s948_s26 + $0x10] sm:$0xff]  }
  0x12   : > { %v862_v5 = vld [vmem:[%s948_s26 + $0x20] sm:$0xff]   ;;  %797 = vmatprep.mubr.bf16.mxu0 %v861_v4  ;;  %v864_v11 = vld [vmem:[%s948_s26 + $0x28] sm:$0xff]   ;;  %v866_v13 = vld [vmem:[%s948_s26 + $0x30] sm:$0xff]  }
  0x13   : > { %805 = vmatprep.mubr.bf16.mxu1 %v862_v5  ;;  %v867_v14 = vld [vmem:[%s948_s26 + $0x18] sm:$0xff]  }
  0x14   : > { %788 = vmatpush3.bf16.msra.mxu0 %v856_v3  ;;  %824 = vmatpush3.bf16.msra.mxu1 %v856_v3  ;;  %v868_v15 = vld [vmem:[%s948_s26 + $0x38] sm:$0xff]  }
  0x15   : > { %789 = vmatprep.subr.bf16.mxu0 %v857_v6  ;;  %817 = vmatprep.subr.bf16.mxu1 %v857_v6 }
  0x18   : > { %790 = vmatpush3.bf16.msra.mxu0 %v857_v6  ;;  %825 = vmatpush3.bf16.msra.mxu1 %v857_v6 }
  0x19   : > { %791 = vmatprep.subr.bf16.mxu0 %v858_v7  ;;  %818 = vmatprep.subr.bf16.mxu1 %v858_v7 }
  0x1c   : > { %792 = vmatpush3.bf16.msra.mxu0 %v858_v7  ;;  %826 = vmatpush3.bf16.msra.mxu1 %v858_v7 }
  0x1d   : > { %793 = vmatprep.subr.bf16.mxu0 %v859_v8  ;;  %819 = vmatprep.subr.bf16.mxu1 %v859_v8 }
  0x20   : > { %794 = vmatpush3.bf16.msra.mxu0 %v859_v8  ;;  %827 = vmatpush3.bf16.msra.mxu1 %v859_v8 }
  0x21   : > { %795 = vmatprep.subr.bf16.mxu0 %v860_v9  ;;  %820 = vmatprep.subr.bf16.mxu1 %v860_v9 }
  0x24   : > { %796 = vmatpush3.bf16.msra.mxu0 %v860_v9  ;;  %828 = vmatpush3.bf16.msra.mxu1 %v860_v9 }
  0x27   : > { %798 = vmatmul.mubr.bf16.vlgmr.msra.gmra.mrb[0].mxu0 %v863_v10  ;;  %806 = vmatmul.mubr.bf16.vlgmr.msra.gmra.mrb[0].mxu1 %v864_v11 }
  0x28   : > { %801 = vmatprep.mubr.bf16.mxu0 %v865_v12  ;;  %809 = vmatprep.mubr.bf16.mxu1 %v866_v13 }
  0x2f   : > { %802 = vmatmul.mubr.bf16.gmra.mrb[4].mxu0 %v867_v14  ;;  %810 = vmatmul.mubr.bf16.gmra.mrb[4].mxu1 %v868_v15 }
  0xfa   : > { %v799_v17 = vpop.f32.mrb[0].mxu0  ;;  %v807_v18 = vpop.f32.mrb[0].mxu1 }
  0xfb   : > { %v404_v19 = vadd.f32 %v799_v17, %v667_v16  ;;  %v436_v20 = vadd.f32 %v807_v18, %v667_v16  ;;  %v395_v21 = vpop.f32.mrb[1].mxu0  ;;  %v427_v22 = vpop.f32.mrb[1].mxu1 }
  0xfc   : > { %v396_v23 = vadd.f32 %v667_v16, %v395_v21  ;;  %v428_v24 = vadd.f32 %v667_v16, %v427_v22  ;;  %v800_v25 = vpop.f32.mrb[2].mxu0  ;;  %v808_v26 = vpop.f32.mrb[2].mxu1 }
  0xfd   : > { %v407_v27 = vadd.f32 %v800_v25, %v667_v16  ;;  %v439_v28 = vadd.f32 %v808_v26, %v667_v16  ;;  %v398_v29 = vpop.f32.mrb[3].mxu0  ;;  %v430_v30 = vpop.f32.mrb[3].mxu1  ;;  %v460_v33 = vmax.f32 %v404_v19, 0.0  ;;  %v468_v34 = vmax.f32 %v436_v20, 0.0 }
  0xfe   : > { %v399_v31 = vadd.f32 %v667_v16, %v398_v29  ;;  %v431_v32 = vadd.f32 %v667_v16, %v430_v30  ;;  %v458_v37 = vmax.f32 %v396_v23, 0.0  ;;  %v466_v38 = vmax.f32 %v428_v24, 0.0 }
  0xff   : > { %v461_v35 = vmax.f32 %v407_v27, 0.0  ;;  %v469_v36 = vmax.f32 %v439_v28, 0.0 }
 0x100   : > { %v459_v39 = vmax.f32 %v399_v31, 0.0  ;;  %v467_v40 = vmax.f32 %v431_v32, 0.0 }
 0x101   : > { %v726_v41 = vpack.c.bf16 %v461_v35, %v460_v33  ;;  %v746_v42 = vpack.c.bf16 %v469_v36, %v468_v34 }
 0x102   : > { %v721_v43 = vpack.c.bf16 %v459_v39, %v458_v37  ;;  %v741_v44 = vpack.c.bf16 %v467_v40, %v466_v38  ;;  %v803_v45 = vpop.f32.mrb[4].mxu0  ;;  %v811_v46 = vpop.f32.mrb[4].mxu1 }
 0x103   : > { %758 = vst [vmem:[%s981_s17 + $0x8] sm:$0xff] %v726_v41   ;;  %762 = vst [vmem:[%s981_s17 + $0x28] sm:$0xff] %v746_v42   ;;  %v420_v47 = vadd.f32 %v803_v45, %v667_v16  ;;  %v452_v48 = vadd.f32 %v811_v46, %v667_v16  ;;  %v411_v49 = vpop.f32.mrb[5].mxu0  ;;  %v443_v50 = vpop.f32.mrb[5].mxu1 }
 0x104   : > { %722 = vst [vmem:[%s981_s17] sm:$0xff] %v721_v43   ;;  %761 = vst [vmem:[%s981_s17 + $0x20] sm:$0xff] %v741_v44   ;;  %v412_v51 = vadd.f32 %v667_v16, %v411_v49  ;;  %v444_v52 = vadd.f32 %v667_v16, %v443_v50  ;;  %v804_v53 = vpop.f32.mrb[6].mxu0  ;;  %v812_v54 = vpop.f32.mrb[6].mxu1 }
 0x105   : > { %v423_v55 = vadd.f32 %v804_v53, %v667_v16  ;;  %v455_v56 = vadd.f32 %v812_v54, %v667_v16  ;;  %v414_v57 = vpop.f32.mrb[7].mxu0  ;;  %v446_v58 = vpop.f32.mrb[7].mxu1  ;;  %v464_v61 = vmax.f32 %v420_v47, 0.0  ;;  %v472_v62 = vmax.f32 %v452_v48, 0.0 }
 0x106   : > { %v415_v59 = vadd.f32 %v667_v16, %v414_v57  ;;  %v447_v60 = vadd.f32 %v667_v16, %v446_v58  ;;  %v462_v1 = vmax.f32 %v412_v51, 0.0  ;;  %v470_v2 = vmax.f32 %v444_v52, 0.0 }
 0x107   : > { %v465_v63 = vmax.f32 %v423_v55, 0.0  ;;  %v473_v0 = vmax.f32 %v455_v56, 0.0 }
 0x108   : > { %v463_v3 = vmax.f32 %v415_v59, 0.0  ;;  %v471_v4 = vmax.f32 %v447_v60, 0.0 }
 0x109   : > { %v736_v5 = vpack.c.bf16 %v465_v63, %v464_v61  ;;  %v756_v6 = vpack.c.bf16 %v473_v0, %v472_v62 }
 0x10a   : > { %v731_v7 = vpack.c.bf16 %v463_v3, %v462_v1  ;;  %v751_v8 = vpack.c.bf16 %v471_v4, %v470_v2 }
 0x10b   : > { %760 = vst [vmem:[%s981_s17 + $0x18] sm:$0xff] %v736_v5   ;;  %764 = vst [vmem:[%s981_s17 + $0x38] sm:$0xff] %v756_v6  }
 0x10c   : > { %759 = vst [vmem:[%s981_s17 + $0x10] sm:$0xff] %v731_v7   ;;  %763 = vst [vmem:[%s981_s17 + $0x30] sm:$0xff] %v751_v8  }
 0x10d PF: > { %s13_s14 = sadd.s32 1, %s891_s14   ;;  %s1004_s12 = smov %s887_s13 }
 0x10e   : > { %p10_p5 = scmp.ge.s32.totalorder %s13_s14, 6   ;;  %s1005_s13 = smov %s1007_s15 }
 0x110   :  { %12 = sbr.rel (!%p10_p5) target bundleno = 2 (0x2), region = 68 }

// kernel: bottleneck_forward.4
= control target key start
LH: loop header
LB: loop body
LE: loop exit
PB: predicated region body
PF: predicated region fallthrough
CT: control target
= control target key end

     0   :  { %s897_s12 = smov 0   ;;  %s899_s13 = smov 0   ;;  %s984_s0 = inlined_call_operand.vmem [shape: bf16[512,128], index: 0, kind: input, shape index: {}]   ;;  %s985_s1 = inlined_call_operand.vmem [shape: bf16[128,128], index: 1, kind: input, shape index: {}]   ;;  %s986_s2 = inlined_call_operand.vmem [shape: f32[1,128], index: 2, kind: input, shape index: {}]   ;;  %s987_s3 = inlined_call_operand.vmem [shape: bf16[512,128], index: 3, kind: output, shape index: {}]  }
   0x1   :  { %s901_s14 = smov 0  }
   0x2 LB: > { %s22_s15 = sadd.s32 1, %s871_s13  ;;  %p646_p0 = scmp.ge.s32.totalorder %s875_s14, 1  ;;  %s875_s14 = sphi %s901_s14, %s13_s14   ;;  %s871_s13 = sphi %s899_s13, %s989_s13   ;;  %s867_s12 = sphi %s897_s12, %s988_s12  }
   0x3   : > { %p23_p1 = scmp.ge.s32.totalorder %s22_s15, 4  ;;  %p169_p2 = scmp.lt.s32.totalorder %s875_s14, 5 }
   0x5   : > { %s991_s15 = smov (%p23_p1, %s22_s15), 0  ;;  %p170_p3 = pnand %p646_p0, %p169_p2 }
   0x6   : > { %v837_v0 = vld [vmem:[%s985_s1] sm:$0xff] (!%p170_p3)   ;;  %s647_s18 = sshll.u32 (!%p170_p3), %s867_s12, 4  ;;  %v838_v1 = vld [vmem:[%s985_s1 + $0x8] sm:$0xff] (!%p170_p3)   ;;  %v839_v2 = vld [vmem:[%s985_s1 + $0x10] sm:$0xff] (!%p170_p3)  }
   0x7   : > { %173 = sbr.rel (%p170_p3) target bundleno = 267 (0x10b), region = 32  ;;  %p204_p4 = scmp.lt.s32.totalorder (!%p170_p3), %s647_s18, 63  ;;  %765 = vmatprep.subr.bf16.mxu0 (!%p170_p3), %v837_v0  ;;  %797 = vmatprep.subr.bf16.mxu1 (!%p170_p3), %v837_v0  ;;  %v840_v3 = vld [vmem:[%s985_s1 + $0x18] sm:$0xff] (!%p170_p3)   ;;  %v841_v6 = vld [vmem:[%s985_s1 + $0x20] sm:$0xff] (!%p170_p3)   ;;  %v842_v7 = vld [vmem:[%s985_s1 + $0x28] sm:$0xff] (!%p170_p3)  }
   0x8   : > { %766 = vmatpush3.bf16.msra.mxu0 (!%p170_p3), %v837_v0  ;;  %805 = vmatpush3.bf16.msra.mxu1 (!%p170_p3), %v837_v0  ;;  %v843_v8 = vld [vmem:[%s985_s1 + $0x30] sm:$0xff] (!%p170_p3)   ;;  %v844_v9 = vld [vmem:[%s985_s1 + $0x38] sm:$0xff] (!%p170_p3)   ;;  %v651_v17 = vld [vmem:[%s986_s2] ss:$0 sm:$0xff] (!%p170_p3) }
   0x9   : > { %767 = vmatprep.subr.bf16.mxu0 (!%p170_p3), %v838_v1  ;;  %798 = vmatprep.subr.bf16.mxu1 (!%p170_p3), %v838_v1 }
   0xc   : > { %768 = vmatpush3.bf16.msra.mxu0 (!%p170_p3), %v838_v1  ;;  %806 = vmatpush3.bf16.msra.mxu1 (!%p170_p3), %v838_v1 }
   0xd   : > { %769 = vmatprep.subr.bf16.mxu0 (!%p170_p3), %v839_v2  ;;  %799 = vmatprep.subr.bf16.mxu1 (!%p170_p3), %v839_v2 }
   0xe   : > { %s993_s18 = smov (!%p204_p4, %s647_s18), 63 }
   0xf   : > { %s648_s23 = sshll.u32 %s993_s18, 2 }
  0x10   : > { %s932_s26 = scalar_lea.vmem %s984_s0, %s648_s23  ;;  %770 = vmatpush3.bf16.msra.mxu0 %v839_v2  ;;  %807 = vmatpush3.bf16.msra.mxu1 %v839_v2  ;;  %s965_s17 = scalar_lea.vmem %s987_s3, %s648_s23 }
  0x11   : > { %v845_v4 = vld [vmem:[%s932_s26] sm:$0xff]   ;;  %771 = vmatprep.subr.bf16.mxu0 %v840_v3  ;;  %800 = vmatprep.subr.bf16.mxu1 %v840_v3  ;;  %v847_v10 = vld [vmem:[%s932_s26 + $0x8] sm:$0xff]   ;;  %v849_v12 = vld [vmem:[%s932_s26 + $0x10] sm:$0xff]  }
  0x12   : > { %v846_v5 = vld [vmem:[%s932_s26 + $0x20] sm:$0xff]   ;;  %781 = vmatprep.mubr.bf16.mxu0 %v845_v4  ;;  %v848_v11 = vld [vmem:[%s932_s26 + $0x28] sm:$0xff]   ;;  %v850_v13 = vld [vmem:[%s932_s26 + $0x30] sm:$0xff]  }
  0x13   : > { %789 = vmatprep.mubr.bf16.mxu1 %v846_v5  ;;  %v851_v14 = vld [vmem:[%s932_s26 + $0x18] sm:$0xff]  }
  0x14   : > { %772 = vmatpush3.bf16.msra.mxu0 %v840_v3  ;;  %808 = vmatpush3.bf16.msra.mxu1 %v840_v3  ;;  %v852_v15 = vld [vmem:[%s932_s26 + $0x38] sm:$0xff]  }
  0x15   : > { %773 = vmatprep.subr.bf16.mxu0 %v841_v6  ;;  %801 = vmatprep.subr.bf16.mxu1 %v841_v6 }
  0x18   : > { %774 = vmatpush3.bf16.msra.mxu0 %v841_v6  ;;  %809 = vmatpush3.bf16.msra.mxu1 %v841_v6 }
  0x19   : > { %775 = vmatprep.subr.bf16.mxu0 %v842_v7  ;;  %802 = vmatprep.subr.bf16.mxu1 %v842_v7 }
  0x1c   : > { %776 = vmatpush3.bf16.msra.mxu0 %v842_v7  ;;  %810 = vmatpush3.bf16.msra.mxu1 %v842_v7 }
  0x1d   : > { %777 = vmatprep.subr.bf16.mxu0 %v843_v8  ;;  %803 = vmatprep.subr.bf16.mxu1 %v843_v8 }
  0x20   : > { %778 = vmatpush3.bf16.msra.mxu0 %v843_v8  ;;  %811 = vmatpush3.bf16.msra.mxu1 %v843_v8 }
  0x21   : > { %779 = vmatprep.subr.bf16.mxu0 %v844_v9  ;;  %804 = vmatprep.subr.bf16.mxu1 %v844_v9 }
  0x24   : > { %780 = vmatpush3.bf16.msra.mxu0 %v844_v9  ;;  %812 = vmatpush3.bf16.msra.mxu1 %v844_v9 }
  0x27   : > { %782 = vmatmul.mubr.bf16.vlgmr.msra.gmra.mrb[0].mxu0 %v847_v10  ;;  %790 = vmatmul.mubr.bf16.vlgmr.msra.gmra.mrb[0].mxu1 %v848_v11 }
  0x28   : > { %785 = vmatprep.mubr.bf16.mxu0 %v849_v12  ;;  %793 = vmatprep.mubr.bf16.mxu1 %v850_v13 }
  0x2f   : > { %786 = vmatmul.mubr.bf16.gmra.mrb[4].mxu0 %v851_v14  ;;  %794 = vmatmul.mubr.bf16.gmra.mrb[4].mxu1 %v852_v15 }
  0xfa   : > { %v783_v16 = vpop.f32.mrb[0].mxu0  ;;  %v791_v18 = vpop.f32.mrb[0].mxu1 }
  0xfb   : > { %v395_v19 = vpop.f32.mrb[1].mxu0  ;;  %v427_v20 = vpop.f32.mrb[1].mxu1  ;;  %v404_v23 = vadd.f32 %v783_v16, %v651_v17  ;;  %v436_v24 = vadd.f32 %v791_v18, %v651_v17 }
  0xfc   : > { %v784_v21 = vpop.f32.mrb[2].mxu0  ;;  %v792_v22 = vpop.f32.mrb[2].mxu1  ;;  %v396_v29 = vadd.f32 %v651_v17, %v395_v19  ;;  %v428_v30 = vadd.f32 %v651_v17, %v427_v20 }
  0xfd   : > { %v407_v25 = vadd.f32 %v784_v21, %v651_v17  ;;  %v439_v26 = vadd.f32 %v792_v22, %v651_v17  ;;  %v398_v27 = vpop.f32.mrb[3].mxu0  ;;  %v430_v28 = vpop.f32.mrb[3].mxu1 }
  0xfe   : > { %v399_v31 = vadd.f32 %v651_v17, %v398_v27  ;;  %v431_v32 = vadd.f32 %v651_v17, %v430_v28 }
  0xff   : > { %v710_v33 = vpack.c.bf16 %v407_v25, %v404_v23  ;;  %v730_v34 = vpack.c.bf16 %v439_v26, %v436_v24 }
 0x100   : > { %v705_v35 = vpack.c.bf16 %v399_v31, %v396_v29  ;;  %v725_v36 = vpack.c.bf16 %v431_v32, %v428_v30 }
 0x101   : > { %742 = vst [vmem:[%s965_s17 + $0x8] sm:$0xff] %v710_v33   ;;  %746 = vst [vmem:[%s965_s17 + $0x28] sm:$0xff] %v730_v34  }
 0x102   : > { %706 = vst [vmem:[%s965_s17] sm:$0xff] %v705_v35   ;;  %745 = vst [vmem:[%s965_s17 + $0x20] sm:$0xff] %v725_v36   ;;  %v787_v37 = vpop.f32.mrb[4].mxu0  ;;  %v795_v38 = vpop.f32.mrb[4].mxu1 }
 0x103   : > { %v411_v39 = vpop.f32.mrb[5].mxu0  ;;  %v443_v40 = vpop.f32.mrb[5].mxu1  ;;  %v420_v43 = vadd.f32 %v787_v37, %v651_v17  ;;  %v452_v44 = vadd.f32 %v795_v38, %v651_v17 }
 0x104   : > { %v788_v41 = vpop.f32.mrb[6].mxu0  ;;  %v796_v42 = vpop.f32.mrb[6].mxu1  ;;  %v412_v49 = vadd.f32 %v651_v17, %v411_v39  ;;  %v444_v50 = vadd.f32 %v651_v17, %v443_v40 }
 0x105   : > { %v423_v45 = vadd.f32 %v788_v41, %v651_v17  ;;  %v455_v46 = vadd.f32 %v796_v42, %v651_v17  ;;  %v414_v47 = vpop.f32.mrb[7].mxu0  ;;  %v446_v48 = vpop.f32.mrb[7].mxu1 }
 0x106   : > { %v415_v51 = vadd.f32 %v651_v17, %v414_v47  ;;  %v447_v52 = vadd.f32 %v651_v17, %v446_v48 }
 0x107   : > { %v720_v53 = vpack.c.bf16 %v423_v45, %v420_v43  ;;  %v740_v54 = vpack.c.bf16 %v455_v46, %v452_v44 }
 0x108   : > { %v715_v55 = vpack.c.bf16 %v415_v51, %v412_v49  ;;  %v735_v56 = vpack.c.bf16 %v447_v52, %v444_v50 }
 0x109   : > { %744 = vst [vmem:[%s965_s17 + $0x18] sm:$0xff] %v720_v53   ;;  %748 = vst [vmem:[%s965_s17 + $0x38] sm:$0xff] %v740_v54  }
 0x10a   : > { %743 = vst [vmem:[%s965_s17 + $0x10] sm:$0xff] %v715_v55   ;;  %747 = vst [vmem:[%s965_s17 + $0x30] sm:$0xff] %v735_v56  }
 0x10b PF: > { %s13_s14 = sadd.s32 1, %s875_s14   ;;  %s988_s12 = smov %s871_s13 }
 0x10c   : > { %p10_p5 = scmp.ge.s32.totalorder %s13_s14, 6   ;;  %s989_s13 = smov %s991_s15 }
 0x10e   :  { %12 = sbr.rel (!%p10_p5) target bundleno = 2 (0x2), region = 68 }

// kernel: bottleneck_forward.7
= control target key start
LH: loop header
LB: loop body
LE: loop exit
PB: predicated region body
PF: predicated region fallthrough
CT: control target
= control target key end

     0   :  { %s939_s15 = smov 0   ;;  %s941_s16 = smov 0   ;;  %s1066_s0 = inlined_call_operand.vmem [shape: bf16[512,128], index: 0, kind: input, shape index: {}]   ;;  %s1067_s1 = inlined_call_operand.vmem [shape: bf16[128,128], index: 1, kind: input, shape index: {}]   ;;  %s1068_s2 = inlined_call_operand.vmem [shape: f32[1,128], index: 2, kind: input, shape index: {}]   ;;  %s1069_s3 = inlined_call_operand.vmem [shape: bf16[512,128], index: 3, kind: input, shape index: {}]   ;;  %s1070_s4 = inlined_call_operand.vmem [shape: f32[512,128], index: 4, kind: output, shape index: {}]  }
   0x1   :  { %s943_s17 = smov 0  }
   0x2 LB: > { %s23_s18 = sadd.s32 1, %s908_s16  ;;  %p721_p0 = scmp.ge.s32.totalorder %s912_s17, 1  ;;  %s912_s17 = sphi %s943_s17, %s14_s17   ;;  %s908_s16 = sphi %s941_s16, %s1072_s16   ;;  %s904_s15 = sphi %s939_s15, %s1071_s15  }
   0x3   : > { %p24_p1 = scmp.ge.s32.totalorder %s23_s18, 4  ;;  %p210_p2 = scmp.lt.s32.totalorder %s912_s17, 5 }
   0x5   : > { %s1074_s18 = smov (%p24_p1, %s23_s18), 0  ;;  %p211_p3 = pnand %p721_p0, %p210_p2 }
   0x6   : > { %v874_v0 = vld [vmem:[%s1067_s1] sm:$0xff] (!%p211_p3)   ;;  %s722_s21 = sshll.u32 (!%p211_p3), %s904_s15, 4  ;;  %v875_v1 = vld [vmem:[%s1067_s1 + $0x8] sm:$0xff] (!%p211_p3)   ;;  %v876_v2 = vld [vmem:[%s1067_s1 + $0x10] sm:$0xff] (!%p211_p3)  }
   0x7   : > { %214 = sbr.rel (%p211_p3) target bundleno = 269 (0x10d), region = 36  ;;  %p255_p4 = scmp.lt.s32.totalorder (!%p211_p3), %s722_s21, 63  ;;  %802 = vmatprep.subr.bf16.mxu0 (!%p211_p3), %v874_v0  ;;  %834 = vmatprep.subr.bf16.mxu1 (!%p211_p3), %v874_v0  ;;  %v877_v3 = vld [vmem:[%s1067_s1 + $0x18] sm:$0xff] (!%p211_p3)   ;;  %v878_v6 = vld [vmem:[%s1067_s1 + $0x20] sm:$0xff] (!%p211_p3)   ;;  %v879_v7 = vld [vmem:[%s1067_s1 + $0x28] sm:$0xff] (!%p211_p3)  }
   0x8   : > { %803 = vmatpush3.bf16.msra.mxu0 (!%p211_p3), %v874_v0  ;;  %842 = vmatpush3.bf16.msra.mxu1 (!%p211_p3), %v874_v0  ;;  %v880_v8 = vld [vmem:[%s1067_s1 + $0x30] sm:$0xff] (!%p211_p3)   ;;  %v881_v9 = vld [vmem:[%s1067_s1 + $0x38] sm:$0xff] (!%p211_p3)   ;;  %v1013_v20 = vld [vmem:[%s1068_s2] ss:$0 sm:$0xff] (!%p211_p3) }
   0x9   : > { %804 = vmatprep.subr.bf16.mxu0 (!%p211_p3), %v875_v1  ;;  %835 = vmatprep.subr.bf16.mxu1 (!%p211_p3), %v875_v1 }
   0xc   : > { %805 = vmatpush3.bf16.msra.mxu0 (!%p211_p3), %v875_v1  ;;  %843 = vmatpush3.bf16.msra.mxu1 (!%p211_p3), %v875_v1 }
   0xd   : > { %806 = vmatprep.subr.bf16.mxu0 (!%p211_p3), %v876_v2  ;;  %836 = vmatprep.subr.bf16.mxu1 (!%p211_p3), %v876_v2 }
   0xe   : > { %s1076_s21 = smov (!%p255_p4, %s722_s21), 63 }
   0xf   : > { %s723_s26 = sshll.u32 %s1076_s21, 2  ;;  %s727_s23 = sshll.u32 %s1076_s21, 3 }
  0x10   : > { %s974_s29 = scalar_lea.vmem %s1066_s0, %s723_s26  ;;  %807 = vmatpush3.bf16.msra.mxu0 %v876_v2  ;;  %844 = vmatpush3.bf16.msra.mxu1 %v876_v2  ;;  %s1004_s19 = scalar_lea.vmem %s1069_s3, %s723_s26 }
  0x11   : > { %v882_v4 = vld [vmem:[%s974_s29] sm:$0xff]   ;;  %808 = vmatprep.subr.bf16.mxu0 %v877_v3  ;;  %837 = vmatprep.subr.bf16.mxu1 %v877_v3  ;;  %v884_v10 = vld [vmem:[%s974_s29 + $0x8] sm:$0xff]   ;;  %v886_v12 = vld [vmem:[%s974_s29 + $0x10] sm:$0xff]   ;;  %s1025_s25 = scalar_lea.vmem %s1070_s4, %s727_s23 }
  0x12   : > { %v883_v5 = vld [vmem:[%s974_s29 + $0x20] sm:$0xff]   ;;  %818 = vmatprep.mubr.bf16.mxu0 %v882_v4  ;;  %v885_v11 = vld [vmem:[%s974_s29 + $0x28] sm:$0xff]   ;;  %v887_v13 = vld [vmem:[%s974_s29 + $0x30] sm:$0xff]  }
  0x13   : > { %826 = vmatprep.mubr.bf16.mxu1 %v883_v5  ;;  %v888_v14 = vld [vmem:[%s974_s29 + $0x18] sm:$0xff]   ;;  %v779_v16 = vld [vmem:[%s1004_s19 + $0x8] sm:$0xff]   ;;  %v748_v18 = vld [vmem:[%s1004_s19] sm:$0xff]  }
  0x14   : > { %809 = vmatpush3.bf16.msra.mxu0 %v877_v3  ;;  %845 = vmatpush3.bf16.msra.mxu1 %v877_v3  ;;  %v889_v15 = vld [vmem:[%s974_s29 + $0x38] sm:$0xff]   ;;  %v783_v17 = vld [vmem:[%s1004_s19 + $0x28] sm:$0xff]   ;;  %v782_v19 = vld [vmem:[%s1004_s19 + $0x20] sm:$0xff]   ;;  %v753_v21 = vunpack.c.l.bf16 %v779_v16  ;;  %v749_v25 = vunpack.c.l.bf16 %v748_v18  ;;  %v754_v31 = vunpack.c.h.bf16 %v779_v16  ;;  %v750_v37 = vunpack.c.h.bf16 %v748_v18 }
  0x15   : > { %810 = vmatprep.subr.bf16.mxu0 %v878_v6  ;;  %838 = vmatprep.subr.bf16.mxu1 %v878_v6  ;;  %v769_v22 = vunpack.c.l.bf16 %v783_v17  ;;  %v765_v26 = vunpack.c.l.bf16 %v782_v19  ;;  %v770_v32 = vunpack.c.h.bf16 %v783_v17  ;;  %v766_v38 = vunpack.c.h.bf16 %v782_v19  ;;  %v781_v49 = vld [vmem:[%s1004_s19 + $0x18] sm:$0xff]   ;;  %v780_v55 = vld [vmem:[%s1004_s19 + $0x10] sm:$0xff]  }
  0x16   : > { %v785_v50 = vld [vmem:[%s1004_s19 + $0x38] sm:$0xff]   ;;  %v784_v56 = vld [vmem:[%s1004_s19 + $0x30] sm:$0xff]   ;;  %v761_v63 = vunpack.c.l.bf16 %v781_v49  ;;  %v757_v5 = vunpack.c.l.bf16 %v780_v55  ;;  %v758_v17 = vunpack.c.h.bf16 %v780_v55 }
  0x17   : > { %v777_v0 = vunpack.c.l.bf16 %v785_v50  ;;  %v774_v18 = vunpack.c.h.bf16 %v784_v56 }
  0x18   : > { %811 = vmatpush3.bf16.msra.mxu0 %v878_v6  ;;  %846 = vmatpush3.bf16.msra.mxu1 %v878_v6  ;;  %v773_v6 = vunpack.c.l.bf16 %v784_v56 }
  0x19   : > { %812 = vmatprep.subr.bf16.mxu0 %v879_v7  ;;  %839 = vmatprep.subr.bf16.mxu1 %v879_v7 }
  0x1c   : > { %813 = vmatpush3.bf16.msra.mxu0 %v879_v7  ;;  %847 = vmatpush3.bf16.msra.mxu1 %v879_v7 }
  0x1d   : > { %814 = vmatprep.subr.bf16.mxu0 %v880_v8  ;;  %840 = vmatprep.subr.bf16.mxu1 %v880_v8 }
  0x20   : > { %815 = vmatpush3.bf16.msra.mxu0 %v880_v8  ;;  %848 = vmatpush3.bf16.msra.mxu1 %v880_v8 }
  0x21   : > { %816 = vmatprep.subr.bf16.mxu0 %v881_v9  ;;  %841 = vmatprep.subr.bf16.mxu1 %v881_v9 }
  0x24   : > { %817 = vmatpush3.bf16.msra.mxu0 %v881_v9  ;;  %849 = vmatpush3.bf16.msra.mxu1 %v881_v9 }
  0x27   : > { %819 = vmatmul.mubr.bf16.vlgmr.msra.gmra.mrb[0].mxu0 %v884_v10  ;;  %827 = vmatmul.mubr.bf16.vlgmr.msra.gmra.mrb[0].mxu1 %v885_v11  ;;  %v762_v11 = vunpack.c.h.bf16 %v781_v49 }
  0x28   : > { %822 = vmatprep.mubr.bf16.mxu0 %v886_v12  ;;  %830 = vmatprep.mubr.bf16.mxu1 %v887_v13  ;;  %v778_v12 = vunpack.c.h.bf16 %v785_v50 }
  0x2f   : > { %823 = vmatmul.mubr.bf16.gmra.mrb[4].mxu0 %v888_v14  ;;  %831 = vmatmul.mubr.bf16.gmra.mrb[4].mxu1 %v889_v15 }
  0xfa   : > { %v820_v23 = vpop.f32.mrb[0].mxu0  ;;  %v828_v24 = vpop.f32.mrb[0].mxu1 }
  0xfb   : > { %v464_v27 = vadd.f32 %v820_v23, %v1013_v20  ;;  %v496_v28 = vadd.f32 %v828_v24, %v1013_v20  ;;  %v455_v29 = vpop.f32.mrb[1].mxu0  ;;  %v487_v30 = vpop.f32.mrb[1].mxu1 }
  0xfc   : > { %v456_v33 = vadd.f32 %v1013_v20, %v455_v29  ;;  %v488_v34 = vadd.f32 %v1013_v20, %v487_v30  ;;  %v821_v35 = vpop.f32.mrb[2].mxu0  ;;  %v829_v36 = vpop.f32.mrb[2].mxu1 }
  0xfd   : > { %v552_v39 = vadd.f32 %v753_v21, %v464_v27  ;;  %v560_v40 = vadd.f32 %v769_v22, %v496_v28  ;;  %v467_v41 = vadd.f32 %v821_v35, %v1013_v20  ;;  %v499_v42 = vadd.f32 %v829_v36, %v1013_v20  ;;  %v458_v43 = vpop.f32.mrb[3].mxu0  ;;  %v490_v44 = vpop.f32.mrb[3].mxu1 }
  0xfe   : > { %v550_v45 = vadd.f32 %v749_v25, %v456_v33  ;;  %v558_v46 = vadd.f32 %v765_v26, %v488_v34  ;;  %v459_v47 = vadd.f32 %v1013_v20, %v458_v43  ;;  %v491_v48 = vadd.f32 %v1013_v20, %v490_v44 }
  0xff   : > { %v568_v51 = vmax.f32 %v552_v39, 0.0  ;;  %v576_v52 = vmax.f32 %v560_v40, 0.0  ;;  %v553_v53 = vadd.f32 %v754_v31, %v467_v41  ;;  %v561_v54 = vadd.f32 %v770_v32, %v499_v42 }
 0x100   : > { %v566_v57 = vmax.f32 %v550_v45, 0.0  ;;  %v574_v58 = vmax.f32 %v558_v46, 0.0  ;;  %v551_v59 = vadd.f32 %v750_v37, %v459_v47  ;;  %v559_v60 = vadd.f32 %v766_v38, %v491_v48 }
 0x101   : > { %584 = vst [vmem:[%s1025_s25 + $0x10] sm:$0xff] %v568_v51  ;;  %592 = vst [vmem:[%s1025_s25 + $0x50] sm:$0xff] %v576_v52  ;;  %v569_v61 = vmax.f32 %v553_v53, 0.0  ;;  %v577_v62 = vmax.f32 %v561_v54, 0.0 }
 0x102   : > { %582 = vst [vmem:[%s1025_s25] sm:$0xff] %v566_v57  ;;  %590 = vst [vmem:[%s1025_s25 + $0x40] sm:$0xff] %v574_v58  ;;  %v567_v1 = vmax.f32 %v551_v59, 0.0  ;;  %v575_v2 = vmax.f32 %v559_v60, 0.0  ;;  %v824_v3 = vpop.f32.mrb[4].mxu0  ;;  %v832_v4 = vpop.f32.mrb[4].mxu1 }
 0x103   : > { %585 = vst [vmem:[%s1025_s25 + $0x18] sm:$0xff] %v569_v61  ;;  %593 = vst [vmem:[%s1025_s25 + $0x58] sm:$0xff] %v577_v62  ;;  %v480_v7 = vadd.f32 %v824_v3, %v1013_v20  ;;  %v512_v8 = vadd.f32 %v832_v4, %v1013_v20  ;;  %v471_v9 = vpop.f32.mrb[5].mxu0  ;;  %v503_v10 = vpop.f32.mrb[5].mxu1 }
 0x104   : > { %583 = vst [vmem:[%s1025_s25 + $0x8] sm:$0xff] %v567_v1  ;;  %591 = vst [vmem:[%s1025_s25 + $0x48] sm:$0xff] %v575_v2  ;;  %v472_v13 = vadd.f32 %v1013_v20, %v471_v9  ;;  %v504_v14 = vadd.f32 %v1013_v20, %v503_v10  ;;  %v825_v15 = vpop.f32.mrb[6].mxu0  ;;  %v833_v16 = vpop.f32.mrb[6].mxu1 }
 0x105   : > { %v556_v19 = vadd.f32 %v761_v63, %v480_v7  ;;  %v564_v21 = vadd.f32 %v777_v0, %v512_v8  ;;  %v483_v22 = vadd.f32 %v825_v15, %v1013_v20  ;;  %v515_v23 = vadd.f32 %v833_v16, %v1013_v20  ;;  %v474_v24 = vpop.f32.mrb[7].mxu0  ;;  %v506_v25 = vpop.f32.mrb[7].mxu1 }
 0x106   : > { %v554_v26 = vadd.f32 %v757_v5, %v472_v13  ;;  %v562_v27 = vadd.f32 %v773_v6, %v504_v14  ;;  %v475_v28 = vadd.f32 %v1013_v20, %v474_v24  ;;  %v507_v29 = vadd.f32 %v1013_v20, %v506_v25 }
 0x107   : > { %v572_v30 = vmax.f32 %v556_v19, 0.0  ;;  %v580_v31 = vmax.f32 %v564_v21, 0.0  ;;  %v557_v32 = vadd.f32 %v762_v11, %v483_v22  ;;  %v565_v33 = vadd.f32 %v778_v12, %v515_v23 }
 0x108   : > { %v570_v34 = vmax.f32 %v554_v26, 0.0  ;;  %v578_v35 = vmax.f32 %v562_v27, 0.0  ;;  %v555_v36 = vadd.f32 %v758_v17, %v475_v28  ;;  %v563_v37 = vadd.f32 %v774_v18, %v507_v29 }
 0x109   : > { %588 = vst [vmem:[%s1025_s25 + $0x30] sm:$0xff] %v572_v30  ;;  %596 = vst [vmem:[%s1025_s25 + $0x70] sm:$0xff] %v580_v31  ;;  %v573_v38 = vmax.f32 %v557_v32, 0.0  ;;  %v581_v39 = vmax.f32 %v565_v33, 0.0 }
 0x10a   : > { %586 = vst [vmem:[%s1025_s25 + $0x20] sm:$0xff] %v570_v34  ;;  %594 = vst [vmem:[%s1025_s25 + $0x60] sm:$0xff] %v578_v35  ;;  %v571_v40 = vmax.f32 %v555_v36, 0.0  ;;  %v579_v20 = vmax.f32 %v563_v37, 0.0 }
 0x10b   : > { %589 = vst [vmem:[%s1025_s25 + $0x38] sm:$0xff] %v573_v38  ;;  %597 = vst [vmem:[%s1025_s25 + $0x78] sm:$0xff] %v581_v39 }
 0x10c   : > { %587 = vst [vmem:[%s1025_s25 + $0x28] sm:$0xff] %v571_v40  ;;  %595 = vst [vmem:[%s1025_s25 + $0x68] sm:$0xff] %v579_v20 }
 0x10d PF: > { %s14_s17 = sadd.s32 1, %s912_s17   ;;  %s1071_s15 = smov %s908_s16 }
 0x10e   : > { %p11_p5 = scmp.ge.s32.totalorder %s14_s17, 6   ;;  %s1072_s16 = smov %s1074_s18 }
 0x110   :  { %13 = sbr.rel (!%p11_p5) target bundleno = 2 (0x2), region = 75 }

// kernel: bottleneck_forward.6
= control target key start
LH: loop header
LB: loop body
LE: loop exit
PB: predicated region body
PF: predicated region fallthrough
CT: control target
= control target key end

     0   :  { %s2745_s12 = smov 0   ;;  %s2747_s13 = smov 0   ;;  %s3184_s0 = inlined_call_operand.vmem [shape: bf16[512,1152], index: 0, kind: input, shape index: {}]   ;;  %s3185_s1 = inlined_call_operand.vmem [shape: bf16[1152,128], index: 1, kind: input, shape index: {}]   ;;  %s3186_s2 = inlined_call_operand.vmem [shape: f32[1,128], index: 2, kind: input, shape index: {}]   ;;  %s3187_s3 = inlined_call_operand.vmem [shape: bf16[512,128], index: 3, kind: output, shape index: {}]  }
   0x1   :  { %s2749_s14 = smov 0  }
   0x2 LB: > { %s22_s15 = sadd.s32 1, %s2719_s13  ;;  %p1949_p0 = scmp.ge.s32.totalorder %s2723_s14, 1  ;;  %s2723_s14 = sphi %s2749_s14, %s13_s14   ;;  %s2719_s13 = sphi %s2747_s13, %s3189_s13   ;;  %s2715_s12 = sphi %s2745_s12, %s3188_s12  }
   0x3   : > { %p23_p1 = scmp.ge.s32.totalorder %s22_s15, 4  ;;  %p170_p2 = scmp.lt.s32.totalorder %s2723_s14, 5 }
   0x5   : > { %s3191_s15 = smov (%p23_p1, %s22_s15), 0  ;;  %p171_p3 = pnand %p1949_p0, %p170_p2 }
   0x6   : > { %v2525_v0 = vld [vmem:[%s3185_s1 + $0x40] sm:$0xff] (!%p171_p3)   ;;  %v2529_v4 = vld [vmem:[%s3185_s1 + $0x48] sm:$0xff] (!%p171_p3)   ;;  %v2533_v8 = vld [vmem:[%s3185_s1 + $0x50] sm:$0xff] (!%p171_p3)   ;;  %s1950_s23 = sshll.u32 (!%p171_p3), %s2715_s12, 4 }
   0x7   : > { %174 = sbr.rel (%p171_p3) target bundleno = 399 (0x18f), region = 32  ;;  %v2526_v1 = vld [vmem:[%s3185_s1 + $0xc0] sm:$0xff] (!%p171_p3)   ;;  %2180 = vmatprep.subr.bf16.mxu0 (!%p171_p3), %v2525_v0  ;;  %v2530_v5 = vld [vmem:[%s3185_s1 + $0xc8] sm:$0xff] (!%p171_p3)   ;;  %v2534_v9 = vld [vmem:[%s3185_s1 + $0xd0] sm:$0xff] (!%p171_p3)   ;;  %p206_p4 = scmp.lt.s32.totalorder (!%p171_p3), %s1950_s23, 63 }
   0x8   : > { %v2527_v2 = vld [vmem:[%s3185_s1] sm:$0xff] (!%p171_p3)   ;;  %2244 = vmatprep.subr.bf16.mxu1 (!%p171_p3), %v2526_v1  ;;  %v2531_v6 = vld [vmem:[%s3185_s1 + $0x8] sm:$0xff] (!%p171_p3)   ;;  %v2535_v10 = vld [vmem:[%s3185_s1 + $0x10] sm:$0xff] (!%p171_p3)  }
   0x9   : > { %v2528_v3 = vld [vmem:[%s3185_s1 + $0x80] sm:$0xff] (!%p171_p3)   ;;  %2181 = vmatpush3.bf16.msra.mxu0 (!%p171_p3), %v2527_v2  ;;  %v2532_v7 = vld [vmem:[%s3185_s1 + $0x88] sm:$0xff] (!%p171_p3)   ;;  %v2536_v11 = vld [vmem:[%s3185_s1 + $0x90] sm:$0xff] (!%p171_p3)  }
   0xa   : > { %2245 = vmatpush3.bf16.msra.mxu1 (!%p171_p3), %v2528_v3  ;;  %2182 = vmatprep.subr.bf16.mxu0 (!%p171_p3), %v2529_v4  ;;  %v2537_v12 = vld [vmem:[%s3185_s1 + $0x58] sm:$0xff] (!%p171_p3)   ;;  %v2541_v16 = vld [vmem:[%s3185_s1 + $0x60] sm:$0xff] (!%p171_p3)   ;;  %v2545_v20 = vld [vmem:[%s3185_s1 + $0x68] sm:$0xff] (!%p171_p3)  }
   0xb   : > { %2246 = vmatprep.subr.bf16.mxu1 (!%p171_p3), %v2530_v5  ;;  %v2538_v13 = vld [vmem:[%s3185_s1 + $0xd8] sm:$0xff] (!%p171_p3)   ;;  %v2542_v17 = vld [vmem:[%s3185_s1 + $0xe0] sm:$0xff] (!%p171_p3)   ;;  %v2546_v21 = vld [vmem:[%s3185_s1 + $0xe8] sm:$0xff] (!%p171_p3)  }
   0xc   : > { %v2539_v14 = vld [vmem:[%s3185_s1 + $0x18] sm:$0xff] (!%p171_p3)   ;;  %v2543_v18 = vld [vmem:[%s3185_s1 + $0x20] sm:$0xff] (!%p171_p3)   ;;  %v2547_v22 = vld [vmem:[%s3185_s1 + $0x28] sm:$0xff] (!%p171_p3)  }
   0xd   : > { %2183 = vmatpush3.bf16.msra.mxu0 (!%p171_p3), %v2531_v6  ;;  %v2540_v15 = vld [vmem:[%s3185_s1 + $0x98] sm:$0xff] (!%p171_p3)   ;;  %v2544_v19 = vld [vmem:[%s3185_s1 + $0xa0] sm:$0xff] (!%p171_p3)   ;;  %v2548_v23 = vld [vmem:[%s3185_s1 + $0xa8] sm:$0xff] (!%p171_p3)  }
   0xe   : > { %2247 = vmatpush3.bf16.msra.mxu1 %v2532_v7  ;;  %2184 = vmatprep.subr.bf16.mxu0 %v2533_v8  ;;  %s3193_s23 = smov (!%p206_p4, %s1950_s23), 63  ;;  %v2549_v24 = vld [vmem:[%s3185_s1 + $0x70] sm:$0xff]   ;;  %v2553_v28 = vld [vmem:[%s3185_s1 + $0x78] sm:$0xff]   ;;  %v2563_v36 = vld [vmem:[%s3185_s1 + $0x140] sm:$0xff]  }
   0xf   : > { %2248 = vmatprep.subr.bf16.mxu1 %v2534_v9  ;;  %v2550_v25 = vld [vmem:[%s3185_s1 + $0xf0] sm:$0xff]   ;;  %s2500_s22 = smul.u32 36, %s3193_s23  ;;  %v2554_v29 = vld [vmem:[%s3185_s1 + $0xf8] sm:$0xff]   ;;  %v2564_v37 = vld [vmem:[%s3185_s1 + $0x1c0] sm:$0xff]  }
  0x10   : > { %v2551_v26 = vld [vmem:[%s3185_s1 + $0x30] sm:$0xff]   ;;  %v2555_v30 = vld [vmem:[%s3185_s1 + $0x38] sm:$0xff]   ;;  %v2565_v38 = vld [vmem:[%s3185_s1 + $0x100] sm:$0xff]  }
  0x11   : > { %2185 = vmatpush3.bf16.msra.mxu0 %v2535_v10  ;;  %v2552_v27 = vld [vmem:[%s3185_s1 + $0xb0] sm:$0xff]   ;;  %s2862_s6 = scalar_lea.vmem %s3184_s0, %s2500_s22  ;;  %v2556_v31 = vld [vmem:[%s3185_s1 + $0xb8] sm:$0xff]   ;;  %v2566_v39 = vld [vmem:[%s3185_s1 + $0x180] sm:$0xff]  }
  0x12   : > { %2249 = vmatpush3.bf16.msra.mxu1 %v2536_v11  ;;  %2186 = vmatprep.subr.bf16.mxu0 %v2537_v12  ;;  %v2557_v32 = vld [vmem:[%s2862_s6] ss:$36 sps:$4 sm:$0xff]   ;;  %v2560_v34 = vld [vmem:[%s2862_s6 + $0x8] ss:$36 sps:$4 sm:$0xff]   ;;  %v2569_v41 = vld [vmem:[%s2862_s6 + $0x54] ss:$36 sps:$4 sm:$0xff]  }
  0x13   : > { %2250 = vmatprep.subr.bf16.mxu1 %v2538_v13  ;;  %v2559_v33 = vld [vmem:[%s2862_s6 + $0x4] ss:$36 sps:$4 sm:$0xff]   ;;  %v2562_v35 = vld [vmem:[%s2862_s6 + $0xc] ss:$36 sps:$4 sm:$0xff]   ;;  %v2577_v48 = vld [vmem:[%s2862_s6 + $0x94] ss:$36 sps:$4 sm:$0xff]  }
  0x14   : > { %1292 = vmatprep.mubr.bf16.mxu0 %v2559_v33  ;;  %1389 = vmatprep.mubr.bf16.mxu1 %v2562_v35  ;;  %v2567_v40 = vld [vmem:[%s2862_s6 + $0x4c] ss:$36 sps:$4 sm:$0xff]   ;;  %v2579_v49 = vld [vmem:[%s2862_s6 + $0x9c] ss:$36 sps:$4 sm:$0xff]   ;;  %v2589_v57 = vld [vmem:[%s2862_s6 + $0xe4] ss:$36 sps:$4 sm:$0xff]  }
  0x15   : > { %2187 = vmatpush3.bf16.msra.mxu0 %v2539_v14  ;;  %v2571_v42 = vld [vmem:[%s2862_s6 + $0x48] ss:$36 sps:$4 sm:$0xff]   ;;  %v2572_v43 = vld [vmem:[%s2862_s6 + $0x50] ss:$36 sps:$4 sm:$0xff]   ;;  %v2582_v51 = vld [vmem:[%s2862_s6 + $0x98] ss:$36 sps:$4 sm:$0xff]  }
  0x16   : > { %2251 = vmatpush3.bf16.msra.mxu1 %v2540_v15  ;;  %2188 = vmatprep.subr.bf16.mxu0 %v2541_v16  ;;  %v2573_v44 = vld [vmem:[%s3185_s1 + $0x148] sm:$0xff]   ;;  %v2581_v50 = vld [vmem:[%s2862_s6 + $0x90] ss:$36 sps:$4 sm:$0xff]   ;;  %v2587_v56 = vld [vmem:[%s2862_s6 + $0xdc] ss:$36 sps:$4 sm:$0xff]  }
  0x17   : > { %2252 = vmatprep.subr.bf16.mxu1 %v2542_v17  ;;  %v2574_v45 = vld [vmem:[%s3185_s1 + $0x1c8] sm:$0xff]   ;;  %v2583_v52 = vld [vmem:[%s3185_s1 + $0x150] sm:$0xff]   ;;  %v2591_v58 = vld [vmem:[%s2862_s6 + $0xd8] ss:$36 sps:$4 sm:$0xff]  }
  0x18   : > { %v2575_v46 = vld [vmem:[%s3185_s1 + $0x108] sm:$0xff]   ;;  %v2584_v53 = vld [vmem:[%s3185_s1 + $0x1d0] sm:$0xff]   ;;  %v2592_v59 = vld [vmem:[%s2862_s6 + $0xe0] ss:$36 sps:$4 sm:$0xff]  }
  0x19   : > { %2189 = vmatpush3.bf16.msra.mxu0 %v2543_v18  ;;  %v2576_v47 = vld [vmem:[%s3185_s1 + $0x188] sm:$0xff]   ;;  %v2585_v54 = vld [vmem:[%s3185_s1 + $0x110] sm:$0xff]   ;;  %v2593_v60 = vld [vmem:[%s3185_s1 + $0x158] sm:$0xff]  }
  0x1a   : > { %2253 = vmatpush3.bf16.msra.mxu1 %v2544_v19  ;;  %2190 = vmatprep.subr.bf16.mxu0 %v2545_v20  ;;  %v2586_v55 = vld [vmem:[%s3185_s1 + $0x190] sm:$0xff]   ;;  %v2594_v61 = vld [vmem:[%s3185_s1 + $0x1d8] sm:$0xff]   ;;  %v2597_v0 = vld [vmem:[%s2862_s6 + $0x124] ss:$36 sps:$4 sm:$0xff]  }
  0x1b   : > { %2254 = vmatprep.subr.bf16.mxu1 %v2546_v21  ;;  %v2595_v62 = vld [vmem:[%s3185_s1 + $0x118] sm:$0xff]   ;;  %v2599_v1 = vld [vmem:[%s2862_s6 + $0x12c] ss:$36 sps:$4 sm:$0xff]   ;;  %v2601_v2 = vld [vmem:[%s2862_s6 + $0x120] ss:$36 sps:$4 sm:$0xff]  }
  0x1c   : > { %v2596_v63 = vld [vmem:[%s3185_s1 + $0x198] sm:$0xff]   ;;  %v2603_v3 = vld [vmem:[%s3185_s1 + $0x160] sm:$0xff]   ;;  %v2602_v4 = vld [vmem:[%s2862_s6 + $0x128] ss:$36 sps:$4 sm:$0xff]  }
  0x1d   : > { %2191 = vmatpush3.bf16.msra.mxu0 %v2547_v22  ;;  %v2604_v5 = vld [vmem:[%s3185_s1 + $0x1e0] sm:$0xff]   ;;  %v2607_v8 = vld [vmem:[%s2862_s6 + $0x16c] ss:$36 sps:$4 sm:$0xff]   ;;  %v2609_v9 = vld [vmem:[%s2862_s6 + $0x174] ss:$36 sps:$4 sm:$0xff]  }
  0x1e   : > { %2255 = vmatpush3.bf16.msra.mxu1 %v2548_v23  ;;  %2192 = vmatprep.subr.bf16.mxu0 %v2549_v24  ;;  %v2605_v6 = vld [vmem:[%s3185_s1 + $0x120] sm:$0xff]   ;;  %v2613_v10 = vld [vmem:[%s3185_s1 + $0x168] sm:$0xff]   ;;  %v2612_v15 = vld [vmem:[%s2862_s6 + $0x170] ss:$36 sps:$4 sm:$0xff]  }
  0x1f   : > { %2256 = vmatprep.subr.bf16.mxu1 %v2550_v25  ;;  %v2606_v7 = vld [vmem:[%s3185_s1 + $0x1a0] sm:$0xff]   ;;  %v2614_v11 = vld [vmem:[%s3185_s1 + $0x1e8] sm:$0xff]   ;;  %v2617_v16 = vld [vmem:[%s2862_s6 + $0x1b4] ss:$36 sps:$4 sm:$0xff]  }
  0x20   : > { %v2611_v12 = vld [vmem:[%s2862_s6 + $0x168] ss:$36 sps:$4 sm:$0xff]   ;;  %v2619_v17 = vld [vmem:[%s2862_s6 + $0x1bc] ss:$36 sps:$4 sm:$0xff]   ;;  %v2623_v18 = vld [vmem:[%s3185_s1 + $0x170] sm:$0xff]  }
  0x21   : > { %2193 = vmatpush3.bf16.msra.mxu0 %v2551_v26  ;;  %v2615_v13 = vld [vmem:[%s3185_s1 + $0x128] sm:$0xff]   ;;  %v2624_v19 = vld [vmem:[%s3185_s1 + $0x1f0] sm:$0xff]   ;;  %v2622_v23 = vld [vmem:[%s2862_s6 + $0x1b8] ss:$36 sps:$4 sm:$0xff]  }
  0x22   : > { %2257 = vmatpush3.bf16.msra.mxu1 %v2552_v27  ;;  %2194 = vmatprep.subr.bf16.mxu0 %v2553_v28  ;;  %v2616_v14 = vld [vmem:[%s3185_s1 + $0x1a8] sm:$0xff]   ;;  %v2625_v20 = vld [vmem:[%s3185_s1 + $0x130] sm:$0xff]   ;;  %v2627_v24 = vld [vmem:[%s2862_s6 + $0x1fc] ss:$36 sps:$4 sm:$0xff]  }
  0x23   : > { %2258 = vmatprep.subr.bf16.mxu1 %v2554_v29  ;;  %v2626_v21 = vld [vmem:[%s3185_s1 + $0x1b0] sm:$0xff]   ;;  %v2629_v25 = vld [vmem:[%s2862_s6 + $0x204] ss:$36 sps:$4 sm:$0xff]   ;;  %v2633_v26 = vld [vmem:[%s3185_s1 + $0x178] sm:$0xff]  }
  0x24   : > { %v2621_v22 = vld [vmem:[%s2862_s6 + $0x1b0] ss:$36 sps:$4 sm:$0xff]   ;;  %v2634_v27 = vld [vmem:[%s3185_s1 + $0x1f8] sm:$0xff]  }
  0x25   : > { %2195 = vmatpush3.bf16.msra.mxu0 %v2555_v30  ;;  %v2635_v28 = vld [vmem:[%s3185_s1 + $0x138] sm:$0xff]   ;;  %v2637_v35 = vld [vmem:[%s2862_s6 + $0x10] ss:$36 sps:$4 sm:$0xff]  }
  0x26   : > { %2259 = vmatpush3.bf16.msra.mxu1 %v2556_v31  ;;  %2308 = vmatprep.subr.bf16.mxu0 %v2563_v36  ;;  %v2636_v29 = vld [vmem:[%s3185_s1 + $0x1b8] sm:$0xff]   ;;  %v2632_v31 = vld [vmem:[%s2862_s6 + $0x200] ss:$36 sps:$4 sm:$0xff]  }
  0x27   : > { %2372 = vmatprep.subr.bf16.mxu1 %v2564_v37  ;;  %v2631_v30 = vld [vmem:[%s2862_s6 + $0x1f8] ss:$36 sps:$4 sm:$0xff]  }
  0x28   : > { %1293 = vmatmul.mubr.bf16.vlgmr.msra.gmra.mrb[0].mxu0 %v2557_v32  ;;  %v2643_v32 = vld [vmem:[%s3185_s1 + $0x200] sm:$0xff]   ;;  %v2639_v33 = vld [vmem:[%s2862_s6 + $0x14] ss:$36 sps:$4 sm:$0xff]  }
  0x29   : > { %1390 = vmatmul.mubr.bf16.vlgmr.msra.gmra.mrb[0].mxu1 %v2560_v34  ;;  %2309 = vmatpush3.bf16.msra.mxu0 %v2565_v38  ;;  %v2642_v34 = vld [vmem:[%s2862_s6 + $0x1c] ss:$36 sps:$4 sm:$0xff]   ;;  %v2646_v38 = vld [vmem:[%s2862_s6 + $0x64] ss:$36 sps:$4 sm:$0xff]  }
  0x2a   : > { %2373 = vmatpush3.bf16.msra.mxu1 %v2566_v39  ;;  %1300 = vmatprep.mubr.bf16.mxu0 %v2567_v40  ;;  %v2640_v36 = vld [vmem:[%s2862_s6 + $0x18] ss:$36 sps:$4 sm:$0xff]   ;;  %v2650_v39 = vld [vmem:[%s3185_s1 + $0x208] sm:$0xff]   ;;  %v2657_v40 = vld [vmem:[%s3185_s1 + $0x210] sm:$0xff]  }
  0x2b   : > { %1397 = vmatprep.mubr.bf16.mxu1 %v2569_v41  ;;  %2310 = vmatprep.subr.bf16.mxu0 %v2573_v44  ;;  %v2644_v37 = vld [vmem:[%s2862_s6 + $0x5c] ss:$36 sps:$4 sm:$0xff]   ;;  %v2653_v44 = vld [vmem:[%s2862_s6 + $0xac] ss:$36 sps:$4 sm:$0xff]  }
  0x2c   : > { %2374 = vmatprep.subr.bf16.mxu1 %v2574_v45  ;;  %v2648_v41 = vld [vmem:[%s2862_s6 + $0x58] ss:$36 sps:$4 sm:$0xff]  }
  0x2d   : > { %2311 = vmatpush3.bf16.msra.mxu0 %v2575_v46  ;;  %v2664_v45 = vld [vmem:[%s3185_s1 + $0x218] sm:$0xff]   ;;  %v2671_v46 = vld [vmem:[%s3185_s1 + $0x220] sm:$0xff]  }
  0x2e   : > { %2375 = vmatpush3.bf16.msra.mxu1 %v2576_v47  ;;  %2312 = vmatprep.subr.bf16.mxu0 %v2583_v52  ;;  %v2655_v47 = vld [vmem:[%s2862_s6 + $0xa0] ss:$36 sps:$4 sm:$0xff]   ;;  %v2662_v52 = vld [vmem:[%s2862_s6 + $0xe8] ss:$36 sps:$4 sm:$0xff]  }
  0x2f   : > { %2376 = vmatprep.subr.bf16.mxu1 %v2584_v53  ;;  %v2685_v53 = vld [vmem:[%s3185_s1 + $0x230] sm:$0xff]  }
  0x30   : > { %1301 = vmatmul.mubr.bf16.gmra.mrb[4].mxu0 %v2571_v42  ;;  %v2649_v42 = vld [vmem:[%s2862_s6 + $0x60] ss:$36 sps:$4 sm:$0xff]  }
  0x31   : > { %1398 = vmatmul.mubr.bf16.gmra.mrb[4].mxu1 %v2572_v43  ;;  %1308 = vmatprep.mubr.bf16.mxu0 %v2577_v48  ;;  %v2651_v43 = vld [vmem:[%s2862_s6 + $0xa4] ss:$36 sps:$4 sm:$0xff]  }
  0x32   : > { %1405 = vmatprep.mubr.bf16.mxu1 %v2579_v49  ;;  %2313 = vmatpush3.bf16.msra.mxu0 %v2585_v54  ;;  %v2656_v48 = vld [vmem:[%s2862_s6 + $0xa8] ss:$36 sps:$4 sm:$0xff]   ;;  %v2663_v54 = vld [vmem:[%s2862_s6 + $0xf0] ss:$36 sps:$4 sm:$0xff]  }
  0x33   : > { %2377 = vmatpush3.bf16.msra.mxu1 %v2586_v55  ;;  %2314 = vmatprep.subr.bf16.mxu0 %v2593_v60  ;;  %v2658_v49 = vld [vmem:[%s2862_s6 + $0xec] ss:$36 sps:$4 sm:$0xff]   ;;  %v2665_v55 = vld [vmem:[%s2862_s6 + $0x134] ss:$36 sps:$4 sm:$0xff]   ;;  %v2672_v60 = vld [vmem:[%s2862_s6 + $0x17c] ss:$36 sps:$4 sm:$0xff]  }
  0x34   : > { %2378 = vmatprep.subr.bf16.mxu1 %v2594_v61  ;;  %v2674_v61 = vld [vmem:[%s2862_s6 + $0x184] ss:$36 sps:$4 sm:$0xff]  }
  0x36   : > { %2315 = vmatpush3.bf16.msra.mxu0 %v2595_v62  ;;  %v2676_v62 = vld [vmem:[%s2862_s6 + $0x178] ss:$36 sps:$4 sm:$0xff]  }
  0x37   : > { %2379 = vmatpush3.bf16.msra.mxu1 %v2596_v63  ;;  %2316 = vmatprep.subr.bf16.mxu0 %v2603_v3  ;;  %v2677_v63 = vld [vmem:[%s2862_s6 + $0x180] ss:$36 sps:$4 sm:$0xff]   ;;  %v2684_v3 = vld [vmem:[%s2862_s6 + $0x1c8] ss:$36 sps:$4 sm:$0xff]  }
  0x38   : > { %1309 = vmatmul.mubr.bf16.gmra.mrb[8].mxu0 %v2581_v50  ;;  %2380 = vmatprep.subr.bf16.mxu1 %v2604_v5  ;;  %v2660_v50 = vld [vmem:[%s2862_s6 + $0xf4] ss:$36 sps:$4 sm:$0xff]  }
  0x39   : > { %1406 = vmatmul.mubr.bf16.gmra.mrb[8].mxu1 %v2582_v51  ;;  %1316 = vmatprep.mubr.bf16.mxu0 %v2587_v56  ;;  %v2678_v51 = vld [vmem:[%s3185_s1 + $0x228] sm:$0xff]   ;;  %v2667_v56 = vld [vmem:[%s2862_s6 + $0x13c] ss:$36 sps:$4 sm:$0xff]   ;;  %v2688_v5 = vld [vmem:[%s2862_s6 + $0x214] ss:$36 sps:$4 sm:$0xff]  }
  0x3a   : > { %1413 = vmatprep.mubr.bf16.mxu1 %v2589_v57  ;;  %2317 = vmatpush3.bf16.msra.mxu0 %v2605_v6  ;;  %v2692_v57 = vld [vmem:[%s3185_s1 + $0x238] sm:$0xff]   ;;  %v2690_v6 = vld [vmem:[%s2862_s6 + $0x208] ss:$36 sps:$4 sm:$0xff]  }
  0x3b   : > { %2381 = vmatpush3.bf16.msra.mxu1 %v2606_v7  ;;  %2318 = vmatprep.subr.bf16.mxu0 %v2613_v10  ;;  %v2691_v7 = vld [vmem:[%s2862_s6 + $0x210] ss:$36 sps:$4 sm:$0xff]   ;;  %v2695_v10 = vld [vmem:[%s2862_s6 + $0x68] ss:$36 sps:$4 sm:$0xff]  }
  0x3c   : > { %2382 = vmatprep.subr.bf16.mxu1 %v2614_v11  ;;  %v2696_v11 = vld [vmem:[%s2862_s6 + $0x188] ss:$36 sps:$4 sm:$0xff]  }
  0x3e   : > { %2319 = vmatpush3.bf16.msra.mxu0 %v2615_v13  ;;  %v2698_v13 = vld [vmem:[%s2862_s6 + $0x1d0] ss:$36 sps:$4 sm:$0xff]  }
  0x3f   : > { %2383 = vmatpush3.bf16.msra.mxu1 %v2616_v14  ;;  %2320 = vmatprep.subr.bf16.mxu0 %v2623_v18  ;;  %v2699_v14 = vld [vmem:[%s2862_s6 + $0xf8] ss:$36 sps:$4 sm:$0xff]   ;;  %v3065_v18 = vld [vmem:[%s3186_s2] ss:$0 sm:$0xff] }
  0x40   : > { %1317 = vmatmul.mubr.bf16.gmra.mrb[12].mxu0 %v2591_v58  ;;  %2384 = vmatprep.subr.bf16.mxu1 %v2624_v19  ;;  %v2669_v58 = vld [vmem:[%s2862_s6 + $0x130] ss:$36 sps:$4 sm:$0xff]  }
  0x41   : > { %1414 = vmatmul.mubr.bf16.gmra.mrb[12].mxu1 %v2592_v59  ;;  %1324 = vmatprep.mubr.bf16.mxu0 %v2597_v0  ;;  %v2670_v59 = vld [vmem:[%s2862_s6 + $0x138] ss:$36 sps:$4 sm:$0xff]   ;;  %v2679_v0 = vld [vmem:[%s2862_s6 + $0x1c4] ss:$36 sps:$4 sm:$0xff]  }
  0x42   : > { %1421 = vmatprep.mubr.bf16.mxu1 %v2599_v1  ;;  %2321 = vmatpush3.bf16.msra.mxu0 %v2625_v20  ;;  %v2681_v1 = vld [vmem:[%s2862_s6 + $0x1cc] ss:$36 sps:$4 sm:$0xff]  }
  0x43   : > { %2385 = vmatpush3.bf16.msra.mxu1 %v2626_v21  ;;  %2322 = vmatprep.subr.bf16.mxu0 %v2633_v26 }
  0x44   : > { %2386 = vmatprep.subr.bf16.mxu1 %v2634_v27 }
  0x46   : > { %2323 = vmatpush3.bf16.msra.mxu0 %v2635_v28 }
  0x47   : > { %2387 = vmatpush3.bf16.msra.mxu1 %v2636_v29  ;;  %2452 = vmatprep.subr.bf16.mxu0 %v2643_v32 }
  0x48   : > { %1325 = vmatmul.mubr.bf16.gmra.mrb[16].mxu0 %v2601_v2  ;;  %2484 = vmatprep.subr.bf16.mxu1 %v2643_v32  ;;  %v2683_v2 = vld [vmem:[%s2862_s6 + $0x1c0] ss:$36 sps:$4 sm:$0xff]  }
  0x49   : > { %1422 = vmatmul.mubr.bf16.gmra.mrb[16].mxu1 %v2602_v4  ;;  %1332 = vmatprep.mubr.bf16.mxu0 %v2607_v8  ;;  %v2686_v4 = vld [vmem:[%s2862_s6 + $0x20c] ss:$36 sps:$4 sm:$0xff]   ;;  %v2693_v8 = vld [vmem:[%s2862_s6 + $0x20] ss:$36 sps:$4 sm:$0xff]  }
  0x4a   : > { %1429 = vmatprep.mubr.bf16.mxu1 %v2609_v9  ;;  %v2694_v9 = vld [vmem:[%s2862_s6 + $0x140] ss:$36 sps:$4 sm:$0xff]  }
  0x50   : > { %1333 = vmatmul.mubr.bf16.gmra.mrb[20].mxu0 %v2611_v12  ;;  %v2697_v12 = vld [vmem:[%s2862_s6 + $0xb0] ss:$36 sps:$4 sm:$0xff]  }
  0x51   : > { %1430 = vmatmul.mubr.bf16.gmra.mrb[20].mxu1 %v2612_v15  ;;  %1340 = vmatprep.mubr.bf16.mxu0 %v2617_v16  ;;  %v2700_v15 = vld [vmem:[%s2862_s6 + $0x218] ss:$36 sps:$4 sm:$0xff]   ;;  %s1953_s6 = sshll.u32 %s3193_s23, 2 }
  0x52   : > { %1437 = vmatprep.mubr.bf16.mxu1 %v2619_v17  ;;  %s3160_s7 = scalar_lea.vmem %s3187_s3, %s1953_s6 }
  0x58   : > { %1341 = vmatmul.mubr.bf16.gmra.mrb[24].mxu0 %v2621_v22 }
  0x59   : > { %1438 = vmatmul.mubr.bf16.gmra.mrb[24].mxu1 %v2622_v23  ;;  %1348 = vmatprep.mubr.bf16.mxu0 %v2627_v24 }
  0x5a   : > { %1445 = vmatprep.mubr.bf16.mxu1 %v2629_v25 }
  0x60   : > { %1349 = vmatmul.mubr.bf16.gmra.mrb[28].mxu0 %v2631_v30 }
  0x61   : > { %1446 = vmatmul.mubr.bf16.gmra.mrb[28].mxu1 %v2632_v31  ;;  %1486 = vmatprep.mubr.bf16.mxu0 %v2639_v33 }
  0x62   : > { %1583 = vmatprep.mubr.bf16.mxu1 %v2642_v34 }
  0x68   : > { %1487 = vmatmul.mubr.bf16.vlgmr.msra.gmra.mrb[32].mxu0 %v2637_v35 }
  0x69   : > { %1584 = vmatmul.mubr.bf16.vlgmr.msra.gmra.mrb[32].mxu1 %v2640_v36  ;;  %2453 = vmatpush3.bf16.msra.mxu0 %v2643_v32 }
  0x6a   : > { %2492 = vmatpush3.bf16.msra.mxu1 %v2643_v32  ;;  %1494 = vmatprep.mubr.bf16.mxu0 %v2644_v37 }
  0x6b   : > { %1591 = vmatprep.mubr.bf16.mxu1 %v2646_v38  ;;  %2454 = vmatprep.subr.bf16.mxu0 %v2650_v39 }
  0x6c   : > { %2485 = vmatprep.subr.bf16.mxu1 %v2650_v39 }
  0x6d   : > { %2455 = vmatpush3.bf16.msra.mxu0 %v2650_v39 }
  0x6e   : > { %2493 = vmatpush3.bf16.msra.mxu1 %v2650_v39  ;;  %2456 = vmatprep.subr.bf16.mxu0 %v2657_v40 }
  0x6f   : > { %2486 = vmatprep.subr.bf16.mxu1 %v2657_v40 }
  0x70   : > { %1495 = vmatmul.mubr.bf16.gmra.mrb[36].mxu0 %v2648_v41 }
  0x71   : > { %1592 = vmatmul.mubr.bf16.gmra.mrb[36].mxu1 %v2649_v42  ;;  %1502 = vmatprep.mubr.bf16.mxu0 %v2651_v43 }
  0x72   : > { %1599 = vmatprep.mubr.bf16.mxu1 %v2653_v44  ;;  %2457 = vmatpush3.bf16.msra.mxu0 %v2657_v40 }
  0x73   : > { %2494 = vmatpush3.bf16.msra.mxu1 %v2657_v40  ;;  %2458 = vmatprep.subr.bf16.mxu0 %v2664_v45 }
  0x74   : > { %2487 = vmatprep.subr.bf16.mxu1 %v2664_v45 }
  0x76   : > { %2459 = vmatpush3.bf16.msra.mxu0 %v2664_v45 }
  0x77   : > { %2495 = vmatpush3.bf16.msra.mxu1 %v2664_v45  ;;  %2460 = vmatprep.subr.bf16.mxu0 %v2671_v46 }
  0x78   : > { %1503 = vmatmul.mubr.bf16.gmra.mrb[40].mxu0 %v2655_v47  ;;  %2488 = vmatprep.subr.bf16.mxu1 %v2671_v46 }
  0x79   : > { %1600 = vmatmul.mubr.bf16.gmra.mrb[40].mxu1 %v2656_v48  ;;  %1510 = vmatprep.mubr.bf16.mxu0 %v2658_v49 }
  0x7a   : > { %1607 = vmatprep.mubr.bf16.mxu1 %v2660_v50  ;;  %2461 = vmatpush3.bf16.msra.mxu0 %v2671_v46 }
  0x7b   : > { %2496 = vmatpush3.bf16.msra.mxu1 %v2671_v46  ;;  %2462 = vmatprep.subr.bf16.mxu0 %v2678_v51 }
  0x7c   : > { %2489 = vmatprep.subr.bf16.mxu1 %v2678_v51 }
  0x7e   : > { %2463 = vmatpush3.bf16.msra.mxu0 %v2678_v51 }
  0x7f   : > { %2497 = vmatpush3.bf16.msra.mxu1 %v2678_v51  ;;  %2464 = vmatprep.subr.bf16.mxu0 %v2685_v53 }
  0x80   : > { %1511 = vmatmul.mubr.bf16.gmra.mrb[44].mxu0 %v2662_v52  ;;  %2490 = vmatprep.subr.bf16.mxu1 %v2685_v53 }
  0x81   : > { %1608 = vmatmul.mubr.bf16.gmra.mrb[44].mxu1 %v2663_v54  ;;  %1518 = vmatprep.mubr.bf16.mxu0 %v2665_v55 }
  0x82   : > { %1615 = vmatprep.mubr.bf16.mxu1 %v2667_v56  ;;  %2465 = vmatpush3.bf16.msra.mxu0 %v2685_v53 }
  0x83   : > { %2498 = vmatpush3.bf16.msra.mxu1 %v2685_v53  ;;  %2466 = vmatprep.subr.bf16.mxu0 %v2692_v57 }
  0x84   : > { %2491 = vmatprep.subr.bf16.mxu1 %v2692_v57 }
  0x86   : > { %2467 = vmatpush3.bf16.msra.mxu0 %v2692_v57 }
  0x87   : > { %2499 = vmatpush3.bf16.msra.mxu1 %v2692_v57 }
  0x88   : > { %1519 = vmatmul.mubr.bf16.gmra.mrb[48].mxu0 %v2669_v58 }
  0x89   : > { %1616 = vmatmul.mubr.bf16.gmra.mrb[48].mxu1 %v2670_v59  ;;  %1526 = vmatprep.mubr.bf16.mxu0 %v2672_v60 }
  0x8a   : > { %1623 = vmatprep.mubr.bf16.mxu1 %v2674_v61 }
  0x90   : > { %1527 = vmatmul.mubr.bf16.gmra.mrb[52].mxu0 %v2676_v62 }
  0x91   : > { %1624 = vmatmul.mubr.bf16.gmra.mrb[52].mxu1 %v2677_v63  ;;  %1534 = vmatprep.mubr.bf16.mxu0 %v2679_v0 }
  0x92   : > { %1631 = vmatprep.mubr.bf16.mxu1 %v2681_v1 }
  0x98   : > { %1535 = vmatmul.mubr.bf16.gmra.mrb[56].mxu0 %v2683_v2 }
  0x99   : > { %1632 = vmatmul.mubr.bf16.gmra.mrb[56].mxu1 %v2684_v3  ;;  %1542 = vmatprep.mubr.bf16.mxu0 %v2686_v4 }
  0x9a   : > { %1639 = vmatprep.mubr.bf16.mxu1 %v2688_v5 }
  0xa0   : > { %1543 = vmatmul.mubr.bf16.gmra.mrb[60].mxu0 %v2690_v6 }
  0xa1   : > { %1640 = vmatmul.mubr.bf16.gmra.mrb[60].mxu1 %v2691_v7  ;;  %2468 = vmatprep.mubr.bf16.mxu0 %v2693_v8 }
  0xa2   : > { %2476 = vmatprep.mubr.bf16.mxu1 %v2694_v9 }
  0xa8   : > { %2469 = vmatmul.mubr.bf16.vlgmr.msra.gmra.mrb[64].mxu0 %v2695_v10 }
  0xa9   : > { %2477 = vmatmul.mubr.bf16.vlgmr.msra.gmra.mrb[64].mxu1 %v2696_v11  ;;  %2472 = vmatprep.mubr.bf16.mxu0 %v2697_v12 }
  0xaa   : > { %2480 = vmatprep.mubr.bf16.mxu1 %v2698_v13 }
  0xb0   : > { %2473 = vmatmul.mubr.bf16.gmra.mrb[68].mxu0 %v2699_v14 }
  0xb1   : > { %2481 = vmatmul.mubr.bf16.gmra.mrb[68].mxu1 %v2700_v15 }
  0xfb   : > { %v2196_v16 = vpop.f32.mrb[0].mxu0 }
  0xfc   : > { %v2260_v17 = vpop.f32.mrb[0].mxu1  ;;  %v2197_v19 = vpop.f32.mrb[1].mxu0 }
  0xfd   : > { %v2198_v20 = vadd.f32 %v2197_v19, %v2196_v16  ;;  %v2261_v21 = vpop.f32.mrb[1].mxu1  ;;  %v2199_v22 = vpop.f32.mrb[2].mxu0 }
  0xfe   : > { %v2262_v23 = vadd.f32 %v2261_v21, %v2260_v17  ;;  %v2263_v24 = vpop.f32.mrb[2].mxu1  ;;  %v2200_v25 = vpop.f32.mrb[3].mxu0 }
  0xff   : > { %v1295_v26 = vadd.f32 %v2198_v20, %v3065_v18  ;;  %v2201_v27 = vadd.f32 %v2200_v25, %v2199_v22  ;;  %v2264_v28 = vpop.f32.mrb[3].mxu1 }
 0x100   : > { %v2265_v29 = vadd.f32 %v2264_v28, %v2263_v24 }
 0x101   : > { %v3068_v30 = vadd.f32 %v2262_v23, %v1295_v26  ;;  %v1298_v31 = vadd.f32 %v2201_v27, %v3065_v18 }
 0x103   : > { %v3071_v32 = vadd.f32 %v2265_v29, %v1298_v31  ;;  %v2202_v33 = vpop.f32.mrb[4].mxu0 }
 0x104   : > { %v2266_v34 = vpop.f32.mrb[4].mxu1  ;;  %v2203_v35 = vpop.f32.mrb[5].mxu0 }
 0x105   : > { %v2204_v36 = vadd.f32 %v2203_v35, %v2202_v33  ;;  %v2267_v37 = vpop.f32.mrb[5].mxu1  ;;  %v2205_v38 = vpop.f32.mrb[6].mxu0 }
 0x106   : > { %v2268_v39 = vadd.f32 %v2267_v37, %v2266_v34  ;;  %v2269_v40 = vpop.f32.mrb[6].mxu1  ;;  %v2206_v41 = vpop.f32.mrb[7].mxu0 }
 0x107   : > { %v1303_v42 = vadd.f32 %v2204_v36, %v3065_v18  ;;  %v2207_v43 = vadd.f32 %v2206_v41, %v2205_v38  ;;  %v2270_v44 = vpop.f32.mrb[7].mxu1 }
 0x108   : > { %v2271_v45 = vadd.f32 %v2270_v44, %v2269_v40 }
 0x109   : > { %v3074_v46 = vadd.f32 %v2268_v39, %v1303_v42  ;;  %v1306_v47 = vadd.f32 %v2207_v43, %v3065_v18 }
 0x10b   : > { %v3077_v48 = vadd.f32 %v2271_v45, %v1306_v47  ;;  %v2208_v49 = vpop.f32.mrb[8].mxu0 }
 0x10c   : > { %v2272_v50 = vpop.f32.mrb[8].mxu1  ;;  %v2209_v51 = vpop.f32.mrb[9].mxu0 }
 0x10d   : > { %v2210_v52 = vadd.f32 %v2209_v51, %v2208_v49  ;;  %v2273_v53 = vpop.f32.mrb[9].mxu1  ;;  %v2211_v54 = vpop.f32.mrb[10].mxu0 }
 0x10e   : > { %v2274_v55 = vadd.f32 %v2273_v53, %v2272_v50  ;;  %v2275_v56 = vpop.f32.mrb[10].mxu1  ;;  %v2212_v57 = vpop.f32.mrb[11].mxu0 }
 0x10f   : > { %v1311_v58 = vadd.f32 %v2210_v52, %v3065_v18  ;;  %v2213_v59 = vadd.f32 %v2212_v57, %v2211_v54  ;;  %v2276_v60 = vpop.f32.mrb[11].mxu1 }
 0x110   : > { %v2277_v61 = vadd.f32 %v2276_v60, %v2275_v56 }
 0x111   : > { %v3080_v62 = vadd.f32 %v2274_v55, %v1311_v58  ;;  %v1314_v63 = vadd.f32 %v2213_v59, %v3065_v18 }
 0x113   : > { %v3083_v0 = vadd.f32 %v2277_v61, %v1314_v63  ;;  %v2214_v1 = vpop.f32.mrb[12].mxu0 }
 0x114   : > { %v2278_v2 = vpop.f32.mrb[12].mxu1  ;;  %v2215_v3 = vpop.f32.mrb[13].mxu0 }
 0x115   : > { %v2216_v4 = vadd.f32 %v2215_v3, %v2214_v1  ;;  %v2279_v5 = vpop.f32.mrb[13].mxu1  ;;  %v2217_v6 = vpop.f32.mrb[14].mxu0 }
 0x116   : > { %v2280_v7 = vadd.f32 %v2279_v5, %v2278_v2  ;;  %v2281_v8 = vpop.f32.mrb[14].mxu1  ;;  %v2218_v9 = vpop.f32.mrb[15].mxu0 }
 0x117   : > { %v1319_v10 = vadd.f32 %v2216_v4, %v3065_v18  ;;  %v2219_v11 = vadd.f32 %v2218_v9, %v2217_v6  ;;  %v2282_v12 = vpop.f32.mrb[15].mxu1 }
 0x118   : > { %v2283_v13 = vadd.f32 %v2282_v12, %v2281_v8 }
 0x119   : > { %v3086_v14 = vadd.f32 %v2280_v7, %v1319_v10  ;;  %v1322_v15 = vadd.f32 %v2219_v11, %v3065_v18 }
 0x11b   : > { %v3089_v16 = vadd.f32 %v2283_v13, %v1322_v15  ;;  %v2220_v17 = vpop.f32.mrb[16].mxu0 }
 0x11c   : > { %v2284_v19 = vpop.f32.mrb[16].mxu1  ;;  %v2221_v20 = vpop.f32.mrb[17].mxu0 }
 0x11d   : > { %v2222_v21 = vadd.f32 %v2221_v20, %v2220_v17  ;;  %v2285_v22 = vpop.f32.mrb[17].mxu1  ;;  %v2223_v23 = vpop.f32.mrb[18].mxu0 }
 0x11e   : > { %v2286_v24 = vadd.f32 %v2285_v22, %v2284_v19  ;;  %v2287_v25 = vpop.f32.mrb[18].mxu1  ;;  %v2224_v26 = vpop.f32.mrb[19].mxu0 }
 0x11f   : > { %v1327_v27 = vadd.f32 %v2222_v21, %v3065_v18  ;;  %v2225_v28 = vadd.f32 %v2224_v26, %v2223_v23  ;;  %v2288_v29 = vpop.f32.mrb[19].mxu1 }
 0x120   : > { %v2289_v31 = vadd.f32 %v2288_v29, %v2287_v25 }
 0x121   : > { %v3092_v33 = vadd.f32 %v2286_v24, %v1327_v27  ;;  %v1330_v34 = vadd.f32 %v2225_v28, %v3065_v18 }
 0x123   : > { %v3095_v35 = vadd.f32 %v2289_v31, %v1330_v34  ;;  %v2226_v36 = vpop.f32.mrb[20].mxu0 }
 0x124   : > { %v2290_v37 = vpop.f32.mrb[20].mxu1  ;;  %v2227_v38 = vpop.f32.mrb[21].mxu0 }
 0x125   : > { %v2228_v39 = vadd.f32 %v2227_v38, %v2226_v36  ;;  %v2291_v40 = vpop.f32.mrb[21].mxu1  ;;  %v2229_v41 = vpop.f32.mrb[22].mxu0 }
 0x126   : > { %v2292_v42 = vadd.f32 %v2291_v40, %v2290_v37  ;;  %v2293_v43 = vpop.f32.mrb[22].mxu1  ;;  %v2230_v44 = vpop.f32.mrb[23].mxu0 }
 0x127   : > { %v1335_v45 = vadd.f32 %v2228_v39, %v3065_v18  ;;  %v2231_v47 = vadd.f32 %v2230_v44, %v2229_v41  ;;  %v2294_v49 = vpop.f32.mrb[23].mxu1 }
 0x128   : > { %v2295_v50 = vadd.f32 %v2294_v49, %v2293_v43 }
 0x129   : > { %v3098_v51 = vadd.f32 %v2292_v42, %v1335_v45  ;;  %v1338_v52 = vadd.f32 %v2231_v47, %v3065_v18 }
 0x12b   : > { %v3101_v53 = vadd.f32 %v2295_v50, %v1338_v52  ;;  %v2232_v54 = vpop.f32.mrb[24].mxu0 }
 0x12c   : > { %v2296_v55 = vpop.f32.mrb[24].mxu1  ;;  %v2233_v56 = vpop.f32.mrb[25].mxu0 }
 0x12d   : > { %v2234_v57 = vadd.f32 %v2233_v56, %v2232_v54  ;;  %v2297_v58 = vpop.f32.mrb[25].mxu1  ;;  %v2235_v59 = vpop.f32.mrb[26].mxu0 }
 0x12e   : > { %v2298_v60 = vadd.f32 %v2297_v58, %v2296_v55  ;;  %v2299_v61 = vpop.f32.mrb[26].mxu1  ;;  %v2236_v63 = vpop.f32.mrb[27].mxu0 }
 0x12f   : > { %v1343_v1 = vadd.f32 %v2234_v57, %v3065_v18  ;;  %v2237_v2 = vadd.f32 %v2236_v63, %v2235_v59  ;;  %v2300_v3 = vpop.f32.mrb[27].mxu1 }
 0x130   : > { %v2301_v4 = vadd.f32 %v2300_v3, %v2299_v61 }
 0x131   : > { %v3104_v5 = vadd.f32 %v2298_v60, %v1343_v1  ;;  %v1346_v6 = vadd.f32 %v2237_v2, %v3065_v18 }
 0x133   : > { %v3107_v7 = vadd.f32 %v2301_v4, %v1346_v6  ;;  %v2238_v8 = vpop.f32.mrb[28].mxu0 }
 0x134   : > { %v2302_v9 = vpop.f32.mrb[28].mxu1  ;;  %v2239_v10 = vpop.f32.mrb[29].mxu0 }
 0x135   : > { %v2240_v11 = vadd.f32 %v2239_v10, %v2238_v8  ;;  %v2303_v12 = vpop.f32.mrb[29].mxu1  ;;  %v2241_v13 = vpop.f32.mrb[30].mxu0 }
 0x136   : > { %v2304_v15 = vadd.f32 %v2303_v12, %v2302_v9  ;;  %v2305_v17 = vpop.f32.mrb[30].mxu1  ;;  %v2242_v19 = vpop.f32.mrb[31].mxu0 }
 0x137   : > { %v1351_v20 = vadd.f32 %v2240_v11, %v3065_v18  ;;  %v2243_v21 = vadd.f32 %v2242_v19, %v2241_v13  ;;  %v2306_v22 = vpop.f32.mrb[31].mxu1 }
 0x138   : > { %v2307_v23 = vadd.f32 %v2306_v22, %v2305_v17 }
 0x139   : > { %v3110_v24 = vadd.f32 %v2304_v15, %v1351_v20  ;;  %v1354_v25 = vadd.f32 %v2243_v21, %v3065_v18 }
 0x13b   : > { %v3113_v26 = vadd.f32 %v2307_v23, %v1354_v25  ;;  %v2324_v27 = vpop.f32.mrb[32].mxu0 }
 0x13c   : > { %v2388_v28 = vpop.f32.mrb[32].mxu1  ;;  %v2325_v29 = vpop.f32.mrb[33].mxu0 }
 0x13d   : > { %v2326_v31 = vadd.f32 %v2325_v29, %v2324_v27  ;;  %v2389_v34 = vpop.f32.mrb[33].mxu1  ;;  %v2327_v36 = vpop.f32.mrb[34].mxu0 }
 0x13e   : > { %v2390_v37 = vadd.f32 %v2389_v34, %v2388_v28  ;;  %v2391_v38 = vpop.f32.mrb[34].mxu1  ;;  %v2328_v39 = vpop.f32.mrb[35].mxu0 }
 0x13f   : > { %v1489_v40 = vadd.f32 %v2326_v31, %v3068_v30  ;;  %v2329_v41 = vadd.f32 %v2328_v39, %v2327_v36  ;;  %v2392_v42 = vpop.f32.mrb[35].mxu1 }
 0x140   : > { %v2393_v43 = vadd.f32 %v2392_v42, %v2391_v38 }
 0x141   : > { %v1492_v44 = vadd.f32 %v2329_v41, %v3071_v32  ;;  %v3117_v45 = vadd.f32 %v2390_v37, %v1489_v40 }
 0x143   : > { %v2330_v18 = vpop.f32.mrb[36].mxu0  ;;  %v3119_v47 = vadd.f32 %v2393_v43, %v1492_v44 }
 0x144   : > { %v2394_v49 = vpop.f32.mrb[36].mxu1  ;;  %v2331_v50 = vpop.f32.mrb[37].mxu0 }
 0x145   : > { %v2332_v52 = vadd.f32 %v2331_v50, %v2330_v18  ;;  %v2395_v54 = vpop.f32.mrb[37].mxu1  ;;  %v2333_v55 = vpop.f32.mrb[38].mxu0 }
 0x146   : > { %v2396_v56 = vadd.f32 %v2395_v54, %v2394_v49  ;;  %v2397_v57 = vpop.f32.mrb[38].mxu1  ;;  %v2334_v58 = vpop.f32.mrb[39].mxu0 }
 0x147   : > { %v1497_v30 = vadd.f32 %v2332_v52, %v3074_v46  ;;  %v2335_v59 = vadd.f32 %v2334_v58, %v2333_v55  ;;  %v2398_v60 = vpop.f32.mrb[39].mxu1 }
 0x148   : > { %v2399_v61 = vadd.f32 %v2398_v60, %v2397_v57 }
 0x149   : > { %v1500_v32 = vadd.f32 %v2335_v59, %v3077_v48  ;;  %v3123_v63 = vadd.f32 %v2396_v56, %v1497_v30 }
 0x14b   : > { %v2336_v1 = vpop.f32.mrb[40].mxu0  ;;  %v3125_v2 = vadd.f32 %v2399_v61, %v1500_v32 }
 0x14c   : > { %v2400_v3 = vpop.f32.mrb[40].mxu1  ;;  %v2337_v4 = vpop.f32.mrb[41].mxu0 }
 0x14d   : > { %v2338_v6 = vadd.f32 %v2337_v4, %v2336_v1  ;;  %v2401_v8 = vpop.f32.mrb[41].mxu1  ;;  %v2339_v9 = vpop.f32.mrb[42].mxu0 }
 0x14e   : > { %v2402_v10 = vadd.f32 %v2401_v8, %v2400_v3  ;;  %v2403_v11 = vpop.f32.mrb[42].mxu1  ;;  %v2340_v12 = vpop.f32.mrb[43].mxu0 }
 0x14f   : > { %v1505_v46 = vadd.f32 %v2338_v6, %v3080_v62  ;;  %v2341_v13 = vadd.f32 %v2340_v12, %v2339_v9  ;;  %v2404_v15 = vpop.f32.mrb[43].mxu1 }
 0x150   : > { %v2405_v17 = vadd.f32 %v2404_v15, %v2403_v11 }
 0x151   : > { %v1508_v48 = vadd.f32 %v2341_v13, %v3083_v0  ;;  %v3129_v19 = vadd.f32 %v2402_v10, %v1505_v46 }
 0x153   : > { %v2342_v20 = vpop.f32.mrb[44].mxu0  ;;  %v3131_v21 = vadd.f32 %v2405_v17, %v1508_v48 }
 0x154   : > { %v2406_v22 = vpop.f32.mrb[44].mxu1  ;;  %v2343_v23 = vpop.f32.mrb[45].mxu0 }
 0x155   : > { %v2344_v25 = vadd.f32 %v2343_v23, %v2342_v20  ;;  %v2407_v27 = vpop.f32.mrb[45].mxu1  ;;  %v2345_v28 = vpop.f32.mrb[46].mxu0 }
 0x156   : > { %v2408_v29 = vadd.f32 %v2407_v27, %v2406_v22  ;;  %v2409_v31 = vpop.f32.mrb[46].mxu1  ;;  %v2346_v34 = vpop.f32.mrb[47].mxu0 }
 0x157   : > { %v1513_v62 = vadd.f32 %v2344_v25, %v3086_v14  ;;  %v2347_v36 = vadd.f32 %v2346_v34, %v2345_v28  ;;  %v2410_v37 = vpop.f32.mrb[47].mxu1 }
 0x158   : > { %v2411_v38 = vadd.f32 %v2410_v37, %v2409_v31 }
 0x159   : > { %v1516_v0 = vadd.f32 %v2347_v36, %v3089_v16  ;;  %v3135_v39 = vadd.f32 %v2408_v29, %v1513_v62 }
 0x15b   : > { %v2348_v40 = vpop.f32.mrb[48].mxu0  ;;  %v3137_v41 = vadd.f32 %v2411_v38, %v1516_v0 }
 0x15c   : > { %v2412_v42 = vpop.f32.mrb[48].mxu1  ;;  %v2349_v43 = vpop.f32.mrb[49].mxu0 }
 0x15d   : > { %v2350_v44 = vadd.f32 %v2349_v43, %v2348_v40  ;;  %v2413_v18 = vpop.f32.mrb[49].mxu1  ;;  %v2351_v49 = vpop.f32.mrb[50].mxu0 }
 0x15e   : > { %v2414_v50 = vadd.f32 %v2413_v18, %v2412_v42  ;;  %v2415_v52 = vpop.f32.mrb[50].mxu1  ;;  %v2352_v54 = vpop.f32.mrb[51].mxu0 }
 0x15f   : > { %v1521_v14 = vadd.f32 %v2350_v44, %v3092_v33  ;;  %v2353_v55 = vadd.f32 %v2352_v54, %v2351_v49  ;;  %v2416_v56 = vpop.f32.mrb[51].mxu1 }
 0x160   : > { %v2417_v57 = vadd.f32 %v2416_v56, %v2415_v52 }
 0x161   : > { %v1524_v16 = vadd.f32 %v2353_v55, %v3095_v35  ;;  %v1618_v58 = vadd.f32 %v2414_v50, %v1521_v14 }
 0x163   : > { %v2354_v30 = vpop.f32.mrb[52].mxu0  ;;  %v3141_v59 = vadd.f32 %v2417_v57, %v1524_v16 }
 0x164   : > { %v2418_v60 = vpop.f32.mrb[52].mxu1  ;;  %v2355_v61 = vpop.f32.mrb[53].mxu0 }
 0x165   : > { %v2356_v32 = vadd.f32 %v2355_v61, %v2354_v30  ;;  %v2419_v1 = vpop.f32.mrb[53].mxu1  ;;  %v2357_v3 = vpop.f32.mrb[54].mxu0 }
 0x166   : > { %v2420_v4 = vadd.f32 %v2419_v1, %v2418_v60  ;;  %v2421_v6 = vpop.f32.mrb[54].mxu1  ;;  %v2358_v8 = vpop.f32.mrb[55].mxu0 }
 0x167   : > { %v1529_v9 = vadd.f32 %v2356_v32, %v3098_v51  ;;  %v2359_v33 = vadd.f32 %v2358_v8, %v2357_v3  ;;  %v2422_v10 = vpop.f32.mrb[55].mxu1 }
 0x168   : > { %v2423_v11 = vadd.f32 %v2422_v10, %v2421_v6 }
 0x169   : > { %v1532_v12 = vadd.f32 %v2359_v33, %v3101_v53  ;;  %v1626_v35 = vadd.f32 %v2420_v4, %v1529_v9 }
 0x16b   : > { %v2360_v46 = vpop.f32.mrb[56].mxu0  ;;  %v1629_v13 = vadd.f32 %v2423_v11, %v1532_v12 }
 0x16c   : > { %v2424_v15 = vpop.f32.mrb[56].mxu1  ;;  %v2361_v17 = vpop.f32.mrb[57].mxu0 }
 0x16d   : > { %v2362_v48 = vadd.f32 %v2361_v17, %v2360_v46  ;;  %v2425_v20 = vpop.f32.mrb[57].mxu1  ;;  %v2363_v22 = vpop.f32.mrb[58].mxu0 }
 0x16e   : > { %v2426_v23 = vadd.f32 %v2425_v20, %v2424_v15  ;;  %v2427_v25 = vpop.f32.mrb[58].mxu1  ;;  %v2364_v27 = vpop.f32.mrb[59].mxu0 }
 0x16f   : > { %v1537_v28 = vadd.f32 %v2362_v48, %v3104_v5  ;;  %v2365_v29 = vadd.f32 %v2364_v27, %v2363_v22  ;;  %v2428_v51 = vpop.f32.mrb[59].mxu1 }
 0x170   : > { %v2429_v31 = vadd.f32 %v2428_v51, %v2427_v25 }
 0x171   : > { %v1540_v34 = vadd.f32 %v2365_v29, %v3107_v7  ;;  %v1634_v62 = vadd.f32 %v2426_v23, %v1537_v28 }
 0x173   : > { %v2366_v53 = vpop.f32.mrb[60].mxu0  ;;  %v3147_v36 = vadd.f32 %v2429_v31, %v1540_v34 }
 0x174   : > { %v2430_v37 = vpop.f32.mrb[60].mxu1  ;;  %v2367_v38 = vpop.f32.mrb[61].mxu0 }
 0x175   : > { %v2368_v0 = vadd.f32 %v2367_v38, %v2366_v53  ;;  %v2431_v40 = vpop.f32.mrb[61].mxu1  ;;  %v2369_v42 = vpop.f32.mrb[62].mxu0 }
 0x176   : > { %v2432_v43 = vadd.f32 %v2431_v40, %v2430_v37  ;;  %v2433_v44 = vpop.f32.mrb[62].mxu1  ;;  %v2370_v18 = vpop.f32.mrb[63].mxu0 }
 0x177   : > { %v1545_v49 = vadd.f32 %v2368_v0, %v3110_v24  ;;  %v2371_v5 = vadd.f32 %v2370_v18, %v2369_v42  ;;  %v2434_v50 = vpop.f32.mrb[63].mxu1 }
 0x178   : > { %v2435_v52 = vadd.f32 %v2434_v50, %v2433_v44 }
 0x179   : > { %v1548_v7 = vadd.f32 %v2371_v5, %v3113_v26  ;;  %v1642_v54 = vadd.f32 %v2432_v43, %v1545_v49 }
 0x17b   : > { %v2470_v14 = vpop.f32.mrb[64].mxu0  ;;  %v1645_v55 = vadd.f32 %v2435_v52, %v1548_v7 }
 0x17c   : > { %v1691_v56 = vadd.f32 %v2470_v14, %v3123_v63  ;;  %v2478_v57 = vpop.f32.mrb[64].mxu1  ;;  %v1682_v16 = vpop.f32.mrb[65].mxu0 }
 0x17d   : > { %v1723_v30 = vadd.f32 %v2478_v57, %v1626_v35  ;;  %v1683_v60 = vadd.f32 %v1682_v16, %v3117_v45  ;;  %v1714_v61 = vpop.f32.mrb[65].mxu1  ;;  %v2471_v32 = vpop.f32.mrb[66].mxu0 }
 0x17e   : > { %v1715_v1 = vadd.f32 %v1714_v61, %v1618_v58  ;;  %v1694_v24 = vadd.f32 %v2471_v32, %v3125_v2  ;;  %v2479_v3 = vpop.f32.mrb[66].mxu1  ;;  %v1685_v4 = vpop.f32.mrb[67].mxu0  ;;  %v1747_v9 = vmax.f32 %v1691_v56, 0.0 }
 0x17f   : > { %v1726_v6 = vadd.f32 %v2479_v3, %v1629_v13  ;;  %v1686_v26 = vadd.f32 %v1685_v4, %v3119_v47  ;;  %v1717_v8 = vpop.f32.mrb[67].mxu1  ;;  %v1755_v10 = vmax.f32 %v1723_v30, 0.0  ;;  %v1745_v11 = vmax.f32 %v1683_v60, 0.0 }
 0x180   : > { %v1748_v33 = vmax.f32 %v1694_v24, 0.0  ;;  %v1718_v63 = vadd.f32 %v1717_v8, %v3141_v59  ;;  %v1753_v58 = vmax.f32 %v1715_v1, 0.0 }
 0x181   : > { %v1756_v45 = vmax.f32 %v1726_v6, 0.0  ;;  %v1746_v2 = vmax.f32 %v1686_v26, 0.0 }
 0x182   : > { %v2141_v12 = vpack.c.bf16 %v1748_v33, %v1747_v9  ;;  %v1754_v47 = vmax.f32 %v1718_v63, 0.0 }
 0x183   : > { %v2161_v35 = vpack.c.bf16 %v1756_v45, %v1755_v10  ;;  %v2136_v46 = vpack.c.bf16 %v1746_v2, %v1745_v11  ;;  %v2474_v13 = vpop.f32.mrb[68].mxu0 }
 0x184   : > { %2173 = vst [vmem:[%s3160_s7 + $0x8] sm:$0xff] %v2141_v12   ;;  %v2156_v59 = vpack.c.bf16 %v1754_v47, %v1753_v58  ;;  %v1707_v15 = vadd.f32 %v2474_v13, %v3135_v39  ;;  %v2482_v17 = vpop.f32.mrb[68].mxu1  ;;  %v1698_v48 = vpop.f32.mrb[69].mxu0 }
 0x185   : > { %2177 = vst [vmem:[%s3160_s7 + $0x28] sm:$0xff] %v2161_v35   ;;  %2137 = vst [vmem:[%s3160_s7] sm:$0xff] %v2136_v46   ;;  %v1739_v20 = vadd.f32 %v2482_v17, %v1642_v54  ;;  %v1699_v22 = vadd.f32 %v1698_v48, %v3129_v19  ;;  %v1730_v23 = vpop.f32.mrb[69].mxu1  ;;  %v2475_v25 = vpop.f32.mrb[70].mxu0 }
 0x186   : > { %2176 = vst [vmem:[%s3160_s7 + $0x20] sm:$0xff] %v2156_v59   ;;  %v1731_v27 = vadd.f32 %v1730_v23, %v1634_v62  ;;  %v1710_v28 = vadd.f32 %v2475_v25, %v3137_v41  ;;  %v2483_v29 = vpop.f32.mrb[70].mxu1  ;;  %v1701_v51 = vpop.f32.mrb[71].mxu0  ;;  %v1751_v53 = vmax.f32 %v1707_v15, 0.0 }
 0x187   : > { %v1742_v31 = vadd.f32 %v2483_v29, %v1645_v55  ;;  %v1702_v34 = vadd.f32 %v1701_v51, %v3131_v21  ;;  %v1733_v39 = vpop.f32.mrb[71].mxu1  ;;  %v1759_v38 = vmax.f32 %v1739_v20, 0.0  ;;  %v1749_v0 = vmax.f32 %v1699_v22, 0.0 }
 0x188   : > { %v1752_v37 = vmax.f32 %v1710_v28, 0.0  ;;  %v1734_v19 = vadd.f32 %v1733_v39, %v3147_v36  ;;  %v1757_v42 = vmax.f32 %v1731_v27, 0.0 }
 0x189   : > { %v1760_v40 = vmax.f32 %v1742_v31, 0.0  ;;  %v1750_v62 = vmax.f32 %v1702_v34, 0.0 }
 0x18a   : > { %v2151_v41 = vpack.c.bf16 %v1752_v37, %v1751_v53  ;;  %v1758_v43 = vmax.f32 %v1734_v19, 0.0 }
 0x18b   : > { %v2171_v44 = vpack.c.bf16 %v1760_v40, %v1759_v38  ;;  %v2146_v18 = vpack.c.bf16 %v1750_v62, %v1749_v0 }
 0x18c   : > { %2175 = vst [vmem:[%s3160_s7 + $0x18] sm:$0xff] %v2151_v41   ;;  %v2166_v49 = vpack.c.bf16 %v1758_v43, %v1757_v42 }
 0x18d   : > { %2179 = vst [vmem:[%s3160_s7 + $0x38] sm:$0xff] %v2171_v44   ;;  %2174 = vst [vmem:[%s3160_s7 + $0x10] sm:$0xff] %v2146_v18  }
 0x18e   : > { %2178 = vst [vmem:[%s3160_s7 + $0x30] sm:$0xff] %v2166_v49  }
 0x18f PF: > { %s13_s14 = sadd.s32 1, %s2723_s14   ;;  %s3188_s12 = smov %s2719_s13 }
 0x190   : > { %p10_p5 = scmp.ge.s32.totalorder %s13_s14, 6   ;;  %s3189_s13 = smov %s3191_s15 }
 0x192   :  { %12 = sbr.rel (!%p10_p5) target bundleno = 2 (0x2), region = 68 }

</bundles_post_ra>
